<compile_context>
chip_gen: v7x
topology: tpu7x:2x2x1
jax: 0.10.0
libtpu: 0.0.40
codegen_flags: <defaults>
</compile_context>

<pallas_src>
import functools

import jax
import jax.numpy as jnp
from jax import lax
from jax.experimental import pallas as pl
from jax.experimental.pallas import tpu as pltpu


def _pick_tile(n, want):
    """Largest tile t <= want with n % t == 0 and (t % 8 == 0 or t == n)."""
    # TODO(synk): mask ragged tails instead of falling back to divisor tiles
    # (a masked KV tail needs -inf scores, not zero padding).
    want = max(1, min(want, n))
    for t in range(want, 0, -1):
        if n % t == 0 and (t % 8 == 0 or t == n):
            return t
    return n


# ----------------------------------------------------------------------------
# Kernel 1: qkv projection with head-aware outputs.
#   grid (B, N/tn).  x block (1, tn, C); w_q/w_k/w_v are (H, C, hd) VMEM
#   residents (fetched once, no per-step weight DMA); q/k/v outputs are
#   (B, H, N, hd) with blocks (1, H, tn, hd).  Scale is folded into q here.
# ----------------------------------------------------------------------------
def _qkv_heads_kernel(x_ref, wq_ref, wk_ref, wv_ref, *rest, num_heads, scale,
                      has_bias, mxu_dtype):
    if has_bias:
        b_ref, q_ref, k_ref, v_ref = rest
    else:
        b_ref = None
        q_ref, k_ref, v_ref = rest

    x = x_ref[0]                                    # (tn, C)
    if mxu_dtype is not None:
        x = x.astype(mxu_dtype)                     # feed the MXU bf16

    # TODO(synk): for head_dim >= 128 a fused (tn, 3C) matmul with lane-dense
    # output uses the MXU better; with hd < 128 the per-head (tn, hd) stores
    # are lane-sparse (could pack 2 heads per 128 lanes).
    for h in range(num_heads):                      # static unroll, H is small
        q = jnp.dot(x, wq_ref[h], preferred_element_type=jnp.float32)
        k = jnp.dot(x, wk_ref[h], preferred_element_type=jnp.float32)
        v = jnp.dot(x, wv_ref[h], preferred_element_type=jnp.float32)
        if has_bias:
            q = q + b_ref[0, h]                     # (1, hd) broadcast, f32
            k = k + b_ref[1, h]
            v = v + b_ref[2, h]
        q_ref[0, h] = (q * scale).astype(q_ref.dtype)   # fold 1/sqrt(hd) once
        k_ref[0, h] = k.astype(k_ref.dtype)
        v_ref[0, h] = v.astype(v_ref.dtype)


# ----------------------------------------------------------------------------
# Kernel 2: flash attention.  grid (B, H, q-tiles, kv-tiles); kv is the
# carried reduction ("arbitrary") held in m/l/acc f32 VMEM scratch.
# ----------------------------------------------------------------------------
def _flash_kernel(q_ref, k_ref, v_ref, o_ref, m_ref, l_ref, acc_ref):
    kv_i = pl.program_id(3)

    @pl.when(kv_i == 0)
    def _():
        m_ref[...] = jnp.full(m_ref.shape, -jnp.inf, dtype=m_ref.dtype)
        l_ref[...] = jnp.zeros(l_ref.shape, dtype=l_ref.dtype)
        acc_ref[...] = jnp.zeros(acc_ref.shape, dtype=acc_ref.dtype)

    q = q_ref[0, 0]                                 # (tq, hd), pre-scaled
    k = k_ref[0, 0]                                 # (tkv, hd)
    v = v_ref[0, 0]                                 # (tkv, hd)

    # s = q @ k^T: MXU sees the storage dtype (bf16 by default), f32 accum.
    s = lax.dot_general(q, k, (((1,), (1,)), ((), ())),
                        preferred_element_type=jnp.float32)   # (tq, tkv)

    # Online softmax; element-wise math stays f32 (v5e-safe).
    m_prev = m_ref[...]
    m_new = jnp.maximum(m_prev, jnp.max(s, axis=-1, keepdims=True))
    alpha = jnp.exp(m_prev - m_new)
    p = jnp.exp(s - m_new)

    l_ref[...] = alpha * l_ref[...] + jnp.sum(p, axis=-1, keepdims=True)
    acc_ref[...] = alpha * acc_ref[...] + jnp.dot(
        p.astype(v.dtype), v, preferred_element_type=jnp.float32)
    m_ref[...] = m_new

    @pl.when(kv_i == pl.num_programs(3) - 1)
    def _():
        # Exact divide: the (tq,1) reciprocal is a single vreg, so approx
        # reciprocal would buy nothing and cost accuracy.
        o_ref[0, 0] = (acc_ref[...] / l_ref[...]).astype(o_ref.dtype)


# ----------------------------------------------------------------------------
# Kernel 3: output projection directly from per-head layout.
#   grid (B, N/tn).  o block (1, H, tn, hd); w_proj is a (H, hd, C) VMEM
#   resident; head reduction happens in-kernel into an f32 scratch, and the
#   final (tn, C) store is lane-dense.  No head-merge transpose in XLA.
# ----------------------------------------------------------------------------
def _proj_heads_kernel(o_ref, w_ref, b_ref, out_ref, acc_ref, *, num_heads,
                       mxu_dtype):
    for h in range(num_heads):                      # static unroll
        oh = o_ref[0, h]                            # (tn, hd)
        if mxu_dtype is not None and oh.dtype != mxu_dtype:
            oh = oh.astype(mxu_dtype)
        contrib = jnp.dot(oh, w_ref[h], preferred_element_type=jnp.float32)
        if h == 0:
            acc_ref[...] = contrib
        else:
            acc_ref[...] += contrib
    out_ref[0] = (acc_ref[...] + b_ref[...]).astype(out_ref.dtype)


# ----------------------------------------------------------------------------
# Full forward pass (matches PyTorch Attention.forward).
# ----------------------------------------------------------------------------
def attention(x, w_qkv, w_proj, b_proj, *, num_heads, b_qkv=None, qk_scale=None,
              mxu_dtype=jnp.bfloat16, tile_n=256, tile_q=256, tile_kv=512,
              vmem_limit_bytes=32 * 1024 * 1024):
    """x: (B, N, C). w_qkv: (C, 3C) pre-transposed, w_proj: (C, C), b_proj: (C,).

    b_qkv: optional (3C,) bias (qkv_bias=True in the PyTorch module).
    mxu_dtype: dtype fed to the MXU / used for q,k,v,o intermediates
      (f32 accumulation everywhere).  None -> exact f32 path.
    """
    B, N, C = x.shape
    H = num_heads
    assert C % H == 0, "C must be divisible by num_heads"
    hd = C // H
    scale = float(qk_scale) if qk_scale is not None else hd ** (-0.5)

    store_dtype = x.dtype if mxu_dtype is None else mxu_dtype   # q/k/v/o
    w_dtype = x.dtype if mxu_dtype is None else mxu_dtype
    x_item = jnp.dtype(x.dtype).itemsize
    s_item = jnp.dtype(store_dtype).itemsize
    w_item = jnp.dtype(w_dtype).itemsize

    # --- weight prep (pure layout; hoist to parameter-load time in a model) --
    w_h = w_qkv.reshape(C, 3, H, hd).transpose(1, 2, 0, 3)      # (3, H, C, hd)
    wq = w_h[0].astype(w_dtype)
    wk = w_h[1].astype(w_dtype)
    wv = w_h[2].astype(w_dtype)
    w_proj_h = w_proj.reshape(H, hd, C).astype(w_dtype)         # (H, hd, C)
    b_proj2 = b_proj.reshape(1, C).astype(jnp.float32)

    tn = _pick_tile(N, tile_n)
    tq = _pick_tile(N, tile_q)
    tkv = _pick_tile(N, tile_kv)

    resident = pl.BlockSpec(memory_space=pltpu.MemorySpace.VMEM)

    # ------------------------------ qkv projection ---------------------------
    x_spec = pl.BlockSpec((1, tn, C), lambda b, n: (b, n, 0))
    qkv_out_spec = pl.BlockSpec((1, H, tn, hd), lambda b, n: (b, 0, n, 0))

    inputs = [x, wq, wk, wv]
    in_specs = [x_spec, resident, resident, resident]
    if b_qkv is not None:
        inputs.append(b_qkv.reshape(3, H, 1, hd).astype(jnp.float32))
        in_specs.append(resident)

    qkv_cost = pl.CostEstimate(
        flops=2 * B * N * C * 3 * C,
        transcendentals=0,
        bytes_accessed=(B * N * C * x_item + 3 * C * C * w_item
                        + 3 * B * N * C * s_item),
    )
    q, k, v = pl.pallas_call(
        functools.partial(_qkv_heads_kernel, num_heads=H, scale=scale,
                          has_bias=b_qkv is not None, mxu_dtype=mxu_dtype),
        out_shape=tuple(jax.ShapeDtypeStruct((B, H, N, hd), store_dtype)
                        for _ in range(3)),
        grid_spec=pltpu.PrefetchScalarGridSpec(
            num_scalar_prefetch=0,
            grid=(B, N // tn),
            in_specs=in_specs,
            out_specs=[qkv_out_spec, qkv_out_spec, qkv_out_spec],
        ),
        compiler_params=pltpu.CompilerParams(
            dimension_semantics=("parallel", "parallel"),
            vmem_limit_bytes=vmem_limit_bytes),
        cost_estimate=qkv_cost,
    )(*inputs)

    # ------------------------------ flash attention --------------------------
    qo_spec = pl.BlockSpec((1, 1, tq, hd), lambda b, h, qi, ki: (b, h, qi, 0))
    kv_spec = pl.BlockSpec((1, 1, tkv, hd), lambda b, h, qi, ki: (b, h, ki, 0))
    # K/V are re-read once per q tile -> reflect in bytes_accessed.
    flash_cost = pl.CostEstimate(
        flops=4 * B * H * N * N * hd,                 # QK^T + PV
        transcendentals=B * H * N * N,                # exp
        bytes_accessed=s_item * B * H * N * hd * (2 + 2 * (N // tq)),
    )
    o = pl.pallas_call(
        _flash_kernel,
        out_shape=jax.ShapeDtypeStruct((B, H, N, hd), store_dtype),
        grid_spec=pltpu.PrefetchScalarGridSpec(
            num_scalar_prefetch=0,
            grid=(B, H, N // tq, N // tkv),
            in_specs=[qo_spec, kv_spec, kv_spec],
            out_specs=qo_spec,
            scratch_shapes=[
                pltpu.VMEM((tq, 1), jnp.float32),     # running max m
                pltpu.VMEM((tq, 1), jnp.float32),     # running sum l
                pltpu.VMEM((tq, hd), jnp.float32),    # output accumulator
            ],
        ),
        compiler_params=pltpu.CompilerParams(
            # B*H*(N/tq) parallel points shard the v7x megacore; kv is the
            # carried reduction and must stay "arbitrary".
            dimension_semantics=("parallel", "parallel", "parallel",
                                 "arbitrary"),
            vmem_limit_bytes=vmem_limit_bytes),
        cost_estimate=flash_cost,
    )(q, k, v)

    # ------------------------------ output projection ------------------------
    o_spec = pl.BlockSpec((1, H, tn, hd), lambda b, n: (b, 0, n, 0))
    out_spec = pl.BlockSpec((1, tn, C), lambda b, n: (b, n, 0))
    proj_cost = pl.CostEstimate(
        flops=2 * B * N * C * C,
        transcendentals=0,
        bytes_accessed=(B * N * C * s_item + C * C * w_item + C * 4
                        + B * N * C * x_item),
    )
    out = pl.pallas_call(
        functools.partial(_proj_heads_kernel, num_heads=H, mxu_dtype=mxu_dtype),
        out_shape=jax.ShapeDtypeStruct((B, N, C), x.dtype),
        grid_spec=pltpu.PrefetchScalarGridSpec(
            num_scalar_prefetch=0,
            grid=(B, N // tn),
            in_specs=[o_spec, resident, resident],
            out_specs=out_spec,
            scratch_shapes=[pltpu.VMEM((tn, C), jnp.float32)],
        ),
        compiler_params=pltpu.CompilerParams(
            dimension_semantics=("parallel", "parallel"),
            vmem_limit_bytes=vmem_limit_bytes),
        cost_estimate=proj_cost,
    )(o, w_proj_h, b_proj2)

    return out


# ----------------------------------------------------------------------------
# Pure-JAX reference mirroring the PyTorch forward.  mxu_dtype controls the
# matmul operand dtype so the reference can be precision-matched to the kernel
# (f32 accumulation either way); mxu_dtype=None is the exact f32 module math.
# ----------------------------------------------------------------------------
def reference_attention(x, w_qkv, w_proj, b_proj, *, num_heads, b_qkv=None,
                        qk_scale=None, mxu_dtype=None):
    B, N, C = x.shape
    hd = C // num_heads
    scale = qk_scale if qk_scale is not None else hd ** (-0.5)

    def mm(a, b):
        if mxu_dtype is not None:
            a = a.astype(mxu_dtype)
            b = b.astype(mxu_dtype)
        return jnp.matmul(a, b, preferred_element_type=jnp.float32)

    qkv = mm(x, w_qkv)                                       # (B, N, 3C) f32
    if b_qkv is not None:
        qkv = qkv + b_qkv
    qkv = qkv.reshape(B, N, 3, num_heads, hd).transpose(2, 0, 3, 1, 4)
    q, k, v = qkv[0], qkv[1], qkv[2]                         # (B, H, N, hd)
    q = q * scale
    s = mm(q, jnp.swapaxes(k, -2, -1))                       # (B, H, N, N) f32
    m = jnp.max(s, axis=-1, keepdims=True)
    p = jnp.exp(s - m)                                       # f32 numerator
    o = mm(p, v) / jnp.sum(p, axis=-1, keepdims=True)        # softmax @ v
    o = o.transpose(0, 2, 1, 3).reshape(B, N, C)
    return mm(o, w_proj) + b_proj


# ----------------------------------------------------------------------------
# Tests.
# ----------------------------------------------------------------------------
def _max_err(a, b):
    return float(jnp.max(jnp.abs(a - b)))


def _run_case(key, *, B, N, C, num_heads, mxu_dtype, with_qkv_bias,
              matched_tol, f32_tol=None, **kwargs):
    kx, kqkv, kproj, kb, kqb = jax.random.split(key, 5)
    x = jax.random.normal(kx, (B, N, C), dtype=jnp.float32)
    w_qkv = jax.random.normal(kqkv, (C, 3 * C), dtype=jnp.float32) * (C ** -0.5)
    w_proj = jax.random.normal(kproj, (C, C), dtype=jnp.float32) * (C ** -0.5)
    b_proj = jax.random.normal(kb, (C,), dtype=jnp.float32) * 0.02
    b_qkv = (jax.random.normal(kqb, (3 * C,), dtype=jnp.float32) * 0.02
             if with_qkv_bias else None)

    out = attention(x, w_qkv, w_proj, b_proj, num_heads=num_heads,
                    b_qkv=b_qkv, mxu_dtype=mxu_dtype, **kwargs)
    out = jax.block_until_ready(out)
    assert out.shape == (B, N, C)
    assert bool(jnp.all(jnp.isfinite(out)))

    # Precision-matched reference (same operand dtypes into every matmul,
    # f32 accumulation): tight tolerance proves the kernel math is right.
    ref = reference_attention(x, w_qkv, w_proj, b_proj, num_heads=num_heads,
                              b_qkv=b_qkv, mxu_dtype=mxu_dtype)
    assert jnp.allclose(out, ref, atol=matched_tol, rtol=matched_tol), (
        f"matched-precision mismatch, max abs err {_max_err(out, ref)}")

    if f32_tol is not None:
        # Loose sanity bound vs the pure-f32 module math: only quantifies the
        # bf16 MXU-feed quantization, not a kernel bug budget.
        ref32 = reference_attention(x, w_qkv, w_proj, b_proj,
                                    num_heads=num_heads, b_qkv=b_qkv,
                                    mxu_dtype=None)
        assert jnp.allclose(out, ref32, atol=f32_tol, rtol=f32_tol), (
            f"f32 sanity mismatch, max abs err {_max_err(out, ref32)}")


if __name__ == "__main__":
    key = jax.random.PRNGKey(0)
    k1, k2, k3 = jax.random.split(key, 3)

    # 1) Module-default config (qkv_bias=False), bf16 MXU feed (default path).
    _run_case(k1, B=2, N=8, C=32, num_heads=8, mxu_dtype=jnp.bfloat16,
              with_qkv_bias=False, matched_tol=5e-3, f32_tol=1e-1)

    # 2) Multi-tile grids (row / q / kv tiles), qkv bias, bf16 MXU feed:
    #    exercises online-softmax carry across kv tiles and weight residency.
    _run_case(k2, B=2, N=256, C=128, num_heads=4, mxu_dtype=jnp.bfloat16,
              with_qkv_bias=True, matched_tol=5e-3, f32_tol=1e-1,
              tile_n=128, tile_q=128, tile_kv=128)

    # 3) Exact-f32 path (mxu_dtype=None), matching the PyTorch module's f32
    #    semantics.  Tolerance is loose only because XLA's default f32 matmul
    #    precision on TPU may differ from the in-kernel f32 MXU passes.
    _run_case(k3, B=2, N=8, C=32, num_heads=8, mxu_dtype=None,
              with_qkv_bias=False, matched_tol=1e-1)

    print("KERNEL_OK")
</pallas_src>

<mosaic_0001>
module attributes {stable_mosaic.version = 11 : i64} {
  func.func @_qkv_heads_kernel(%arg0: i32, %arg1: i32, %arg2: memref<1x8x32xf32, #tpu.memory_space<vmem>>, %arg3: memref<8x32x4xbf16, #tpu.memory_space<vmem>>, %arg4: memref<8x32x4xbf16, #tpu.memory_space<vmem>>, %arg5: memref<8x32x4xbf16, #tpu.memory_space<vmem>>, %arg6: memref<1x8x8x4xbf16, #tpu.memory_space<vmem>>, %arg7: memref<1x8x8x4xbf16, #tpu.memory_space<vmem>>, %arg8: memref<1x8x8x4xbf16, #tpu.memory_space<vmem>>) attributes {dimension_semantics = [#tpu.dimension_semantics<parallel>, #tpu.dimension_semantics<parallel>], iteration_bounds = array<i64: 2, 1>, scalar_prefetch = 0 : i64, scratch_operands = 0 : i64, tpu.core_type = #tpu.core_type<tc>, window_params = [{transform_indices = @transform_0, window_bounds = array<i64: 1, 8, 32>}, {pipeline_mode = #tpu.pipeline_mode<synchronous>, transform_indices = @transform_1, window_bounds = array<i64: 8, 32, 4>}, {pipeline_mode = #tpu.pipeline_mode<synchronous>, transform_indices = @transform_2, window_bounds = array<i64: 8, 32, 4>}, {pipeline_mode = #tpu.pipeline_mode<synchronous>, transform_indices = @transform_3, window_bounds = array<i64: 8, 32, 4>}, {transform_indices = @transform_4, window_bounds = array<i64: 1, 8, 8, 4>}, {transform_indices = @transform_5, window_bounds = array<i64: 1, 8, 8, 4>}, {transform_indices = @transform_6, window_bounds = array<i64: 1, 8, 8, 4>}]} {
    %c0 = arith.constant 0 : index
    %c0_0 = arith.constant 0 : index
    %c0_1 = arith.constant 0 : index
    %0 = vector.load %arg2[%c0, %c0_0, %c0_1] : memref<1x8x32xf32, #tpu.memory_space<vmem>>, vector<1x8x32xf32>
    %1 = vector.shape_cast %0 : vector<1x8x32xf32> to vector<8x32xf32>
    %2 = arith.truncf %1 : vector<8x32xf32> to vector<8x32xbf16>
    %c0_2 = arith.constant 0 : index
    %c0_3 = arith.constant 0 : index
    %c0_4 = arith.constant 0 : index
    %3 = vector.load %arg3[%c0_2, %c0_3, %c0_4] : memref<8x32x4xbf16, #tpu.memory_space<vmem>>, vector<1x32x4xbf16>
    %4 = vector.shape_cast %3 : vector<1x32x4xbf16> to vector<32x4xbf16>
    %cst = arith.constant dense<0.000000e+00> : vector<8x4xf32>
    %5 = tpu.matmul %2, %4, %cst {dimension_numbers = #tpu.dot_dimension_numbers<[1], [0], [0], [1], [0, 0, 1, 1], [], []>} : vector<8x32xbf16>, vector<32x4xbf16>, vector<8x4xf32> -> vector<8x4xf32>
    %c0_5 = arith.constant 0 : index
    %c0_6 = arith.constant 0 : index
    %c0_7 = arith.constant 0 : index
    %6 = vector.load %arg4[%c0_5, %c0_6, %c0_7] : memref<8x32x4xbf16, #tpu.memory_space<vmem>>, vector<1x32x4xbf16>
    %7 = vector.shape_cast %6 : vector<1x32x4xbf16> to vector<32x4xbf16>
    %cst_8 = arith.constant dense<0.000000e+00> : vector<8x4xf32>
    %8 = tpu.matmul %2, %7, %cst_8 {dimension_numbers = #tpu.dot_dimension_numbers<[1], [0], [0], [1], [0, 0, 1, 1], [], []>} : vector<8x32xbf16>, vector<32x4xbf16>, vector<8x4xf32> -> vector<8x4xf32>
    %c0_9 = arith.constant 0 : index
    %c0_10 = arith.constant 0 : index
    %c0_11 = arith.constant 0 : index
    %9 = vector.load %arg5[%c0_9, %c0_10, %c0_11] : memref<8x32x4xbf16, #tpu.memory_space<vmem>>, vector<1x32x4xbf16>
    %10 = vector.shape_cast %9 : vector<1x32x4xbf16> to vector<32x4xbf16>
    %cst_12 = arith.constant dense<0.000000e+00> : vector<8x4xf32>
    %11 = tpu.matmul %2, %10, %cst_12 {dimension_numbers = #tpu.dot_dimension_numbers<[1], [0], [0], [1], [0, 0, 1, 1], [], []>} : vector<8x32xbf16>, vector<32x4xbf16>, vector<8x4xf32> -> vector<8x4xf32>
    %cst_13 = arith.constant 5.000000e-01 : f32
    %12 = vector.broadcast %cst_13 : f32 to vector<8x4xf32>
    %13 = arith.mulf %5, %12 : vector<8x4xf32>
    %14 = arith.truncf %13 : vector<8x4xf32> to vector<8x4xbf16>
    %c0_14 = arith.constant 0 : index
    %c0_15 = arith.constant 0 : index
    %c0_16 = arith.constant 0 : index
    %c0_17 = arith.constant 0 : index
    %15 = vector.load %arg6[%c0_14, %c0_15, %c0_16, %c0_17] : memref<1x8x8x4xbf16, #tpu.memory_space<vmem>>, vector<1x1x8x4xbf16>
    %16 = vector.shape_cast %15 : vector<1x1x8x4xbf16> to vector<8x4xbf16>
    %17 = vector.shape_cast %14 : vector<8x4xbf16> to vector<1x1x8x4xbf16>
    tpu.vector_store %arg6[%c0_14, %c0_15, %c0_16, %c0_17], %17 {strides = array<i32>} : memref<1x8x8x4xbf16, #tpu.memory_space<vmem>>, vector<1x1x8x4xbf16>,
    %18 = arith.truncf %8 : vector<8x4xf32> to vector<8x4xbf16>
    %c0_18 = arith.constant 0 : index
    %c0_19 = arith.constant 0 : index
    %c0_20 = arith.constant 0 : index
    %c0_21 = arith.constant 0 : index
    %19 = vector.load %arg7[%c0_18, %c0_19, %c0_20, %c0_21] : memref<1x8x8x4xbf16, #tpu.memory_space<vmem>>, vector<1x1x8x4xbf16>
    %20 = vector.shape_cast %19 : vector<1x1x8x4xbf16> to vector<8x4xbf16>
    %21 = vector.shape_cast %18 : vector<8x4xbf16> to vector<1x1x8x4xbf16>
    tpu.vector_store %arg7[%c0_18, %c0_19, %c0_20, %c0_21], %21 {strides = array<i32>} : memref<1x8x8x4xbf16, #tpu.memory_space<vmem>>, vector<1x1x8x4xbf16>,
    %22 = arith.truncf %11 : vector<8x4xf32> to vector<8x4xbf16>
    %c0_22 = arith.constant 0 : index
    %c0_23 = arith.constant 0 : index
    %c0_24 = arith.constant 0 : index
    %c0_25 = arith.constant 0 : index
    %23 = vector.load %arg8[%c0_22, %c0_23, %c0_24, %c0_25] : memref<1x8x8x4xbf16, #tpu.memory_space<vmem>>, vector<1x1x8x4xbf16>
    %24 = vector.shape_cast %23 : vector<1x1x8x4xbf16> to vector<8x4xbf16>
    %25 = vector.shape_cast %22 : vector<8x4xbf16> to vector<1x1x8x4xbf16>
    tpu.vector_store %arg8[%c0_22, %c0_23, %c0_24, %c0_25], %25 {strides = array<i32>} : memref<1x8x8x4xbf16, #tpu.memory_space<vmem>>, vector<1x1x8x4xbf16>,
    %c1 = arith.constant 1 : index
    %c0_26 = arith.constant 0 : index
    %c0_27 = arith.constant 0 : index
    %26 = vector.load %arg3[%c1, %c0_26, %c0_27] : memref<8x32x4xbf16, #tpu.memory_space<vmem>>, vector<1x32x4xbf16>
    %27 = vector.shape_cast %26 : vector<1x32x4xbf16> to vector<32x4xbf16>
    %cst_28 = arith.constant dense<0.000000e+00> : vector<8x4xf32>
    %28 = tpu.matmul %2, %27, %cst_28 {dimension_numbers = #tpu.dot_dimension_numbers<[1], [0], [0], [1], [0, 0, 1, 1], [], []>} : vector<8x32xbf16>, vector<32x4xbf16>, vector<8x4xf32> -> vector<8x4xf32>
    %c1_29 = arith.constant 1 : index
    %c0_30 = arith.constant 0 : index
    %c0_31 = arith.constant 0 : index
    %29 = vector.load %arg4[%c1_29, %c0_30, %c0_31] : memref<8x32x4xbf16, #tpu.memory_space<vmem>>, vector<1x32x4xbf16>
    %30 = vector.shape_cast %29 : vector<1x32x4xbf16> to vector<32x4xbf16>
    %cst_32 = arith.constant dense<0.000000e+00> : vector<8x4xf32>
    %31 = tpu.matmul %2, %30, %cst_32 {dimension_numbers = #tpu.dot_dimension_numbers<[1], [0], [0], [1], [0, 0, 1, 1], [], []>} : vector<8x32xbf16>, vector<32x4xbf16>, vector<8x4xf32> -> vector<8x4xf32>
    %c1_33 = arith.constant 1 : index
    %c0_34 = arith.constant 0 : index
    %c0_35 = arith.constant 0 : index
    %32 = vector.load %arg5[%c1_33, %c0_34, %c0_35] : memref<8x32x4xbf16, #tpu.memory_space<vmem>>, vector<1x32x4xbf16>
    %33 = vector.shape_cast %32 : vector<1x32x4xbf16> to vector<32x4xbf16>
    %cst_36 = arith.constant dense<0.000000e+00> : vector<8x4xf32>
    %34 = tpu.matmul %2, %33, %cst_36 {dimension_numbers = #tpu.dot_dimension_numbers<[1], [0], [0], [1], [0, 0, 1, 1], [], []>} : vector<8x32xbf16>, vector<32x4xbf16>, vector<8x4xf32> -> vector<8x4xf32>
    %cst_37 = arith.constant 5.000000e-01 : f32
    %35 = vector.broadcast %cst_37 : f32 to vector<8x4xf32>
    %36 = arith.mulf %28, %35 : vector<8x4xf32>
    %37 = arith.truncf %36 : vector<8x4xf32> to vector<8x4xbf16>
    %c0_38 = arith.constant 0 : index
    %c1_39 = arith.constant 1 : index
    %c0_40 = arith.constant 0 : index
    %c0_41 = arith.constant 0 : index
    %38 = vector.load %arg6[%c0_38, %c1_39, %c0_40, %c0_41] : memref<1x8x8x4xbf16, #tpu.memory_space<vmem>>, vector<1x1x8x4xbf16>
    %39 = vector.shape_cast %38 : vector<1x1x8x4xbf16> to vector<8x4xbf16>
    %40 = vector.shape_cast %37 : vector<8x4xbf16> to vector<1x1x8x4xbf16>
    tpu.vector_store %arg6[%c0_38, %c1_39, %c0_40, %c0_41], %40 {strides = array<i32>} : memref<1x8x8x4xbf16, #tpu.memory_space<vmem>>, vector<1x1x8x4xbf16>,
    %41 = arith.truncf %31 : vector<8x4xf32> to vector<8x4xbf16>
    %c0_42 = arith.constant 0 : index
    %c1_43 = arith.constant 1 : index
    %c0_44 = arith.constant 0 : index
    %c0_45 = arith.constant 0 : index
    %42 = vector.load %arg7[%c0_42, %c1_43, %c0_44, %c0_45] : memref<1x8x8x4xbf16, #tpu.memory_space<vmem>>, vector<1x1x8x4xbf16>
    %43 = vector.shape_cast %42 : vector<1x1x8x4xbf16> to vector<8x4xbf16>
    %44 = vector.shape_cast %41 : vector<8x4xbf16> to vector<1x1x8x4xbf16>
    tpu.vector_store %arg7[%c0_42, %c1_43, %c0_44, %c0_45], %44 {strides = array<i32>} : memref<1x8x8x4xbf16, #tpu.memory_space<vmem>>, vector<1x1x8x4xbf16>,
    %45 = arith.truncf %34 : vector<8x4xf32> to vector<8x4xbf16>
    %c0_46 = arith.constant 0 : index
    %c1_47 = arith.constant 1 : index
    %c0_48 = arith.constant 0 : index
    %c0_49 = arith.constant 0 : index
    %46 = vector.load %arg8[%c0_46, %c1_47, %c0_48, %c0_49] : memref<1x8x8x4xbf16, #tpu.memory_space<vmem>>, vector<1x1x8x4xbf16>
    %47 = vector.shape_cast %46 : vector<1x1x8x4xbf16> to vector<8x4xbf16>
    %48 = vector.shape_cast %45 : vector<8x4xbf16> to vector<1x1x8x4xbf16>
    tpu.vector_store %arg8[%c0_46, %c1_47, %c0_48, %c0_49], %48 {strides = array<i32>} : memref<1x8x8x4xbf16, #tpu.memory_space<vmem>>, vector<1x1x8x4xbf16>,
    %c2 = arith.constant 2 : index
    %c0_50 = arith.constant 0 : index
    %c0_51 = arith.constant 0 : index
    %49 = vector.load %arg3[%c2, %c0_50, %c0_51] : memref<8x32x4xbf16, #tpu.memory_space<vmem>>, vector<1x32x4xbf16>
    %50 = vector.shape_cast %49 : vector<1x32x4xbf16> to vector<32x4xbf16>
    %cst_52 = arith.constant dense<0.000000e+00> : vector<8x4xf32>
    %51 = tpu.matmul %2, %50, %cst_52 {dimension_numbers = #tpu.dot_dimension_numbers<[1], [0], [0], [1], [0, 0, 1, 1], [], []>} : vector<8x32xbf16>, vector<32x4xbf16>, vector<8x4xf32> -> vector<8x4xf32>
    %c2_53 = arith.constant 2 : index
    %c0_54 = arith.constant 0 : index
    %c0_55 = arith.constant 0 : index
    %52 = vector.load %arg4[%c2_53, %c0_54, %c0_55] : memref<8x32x4xbf16, #tpu.memory_space<vmem>>, vector<1x32x4xbf16>
    %53 = vector.shape_cast %52 : vector<1x32x4xbf16> to vector<32x4xbf16>
    %cst_56 = arith.constant dense<0.000000e+00> : vector<8x4xf32>
    %54 = tpu.matmul %2, %53, %cst_56 {dimension_numbers = #tpu.dot_dimension_numbers<[1], [0], [0], [1], [0, 0, 1, 1], [], []>} : vector<8x32xbf16>, vector<32x4xbf16>, vector<8x4xf32> -> vector<8x4xf32>
    %c2_57 = arith.constant 2 : index
    %c0_58 = arith.constant 0 : index
    %c0_59 = arith.constant 0 : index
    %55 = vector.load %arg5[%c2_57, %c0_58, %c0_59] : memref<8x32x4xbf16, #tpu.memory_space<vmem>>, vector<1x32x4xbf16>
    %56 = vector.shape_cast %55 : vector<1x32x4xbf16> to vector<32x4xbf16>
    %cst_60 = arith.constant dense<0.000000e+00> : vector<8x4xf32>
    %57 = tpu.matmul %2, %56, %cst_60 {dimension_numbers = #tpu.dot_dimension_numbers<[1], [0], [0], [1], [0, 0, 1, 1], [], []>} : vector<8x32xbf16>, vector<32x4xbf16>, vector<8x4xf32> -> vector<8x4xf32>
    %cst_61 = arith.constant 5.000000e-01 : f32
    %58 = vector.broadcast %cst_61 : f32 to vector<8x4xf32>
    %59 = arith.mulf %51, %58 : vector<8x4xf32>
    %60 = arith.truncf %59 : vector<8x4xf32> to vector<8x4xbf16>
    %c0_62 = arith.constant 0 : index
    %c2_63 = arith.constant 2 : index
    %c0_64 = arith.constant 0 : index
    %c0_65 = arith.constant 0 : index
    %61 = vector.load %arg6[%c0_62, %c2_63, %c0_64, %c0_65] : memref<1x8x8x4xbf16, #tpu.memory_space<vmem>>, vector<1x1x8x4xbf16>
    %62 = vector.shape_cast %61 : vector<1x1x8x4xbf16> to vector<8x4xbf16>
    %63 = vector.shape_cast %60 : vector<8x4xbf16> to vector<1x1x8x4xbf16>
    tpu.vector_store %arg6[%c0_62, %c2_63, %c0_64, %c0_65], %63 {strides = array<i32>} : memref<1x8x8x4xbf16, #tpu.memory_space<vmem>>, vector<1x1x8x4xbf16>,
    %64 = arith.truncf %54 : vector<8x4xf32> to vector<8x4xbf16>
    %c0_66 = arith.constant 0 : index
    %c2_67 = arith.constant 2 : index
    %c0_68 = arith.constant 0 : index
    %c0_69 = arith.constant 0 : index
    %65 = vector.load %arg7[%c0_66, %c2_67, %c0_68, %c0_69] : memref<1x8x8x4xbf16, #tpu.memory_space<vmem>>, vector<1x1x8x4xbf16>
    %66 = vector.shape_cast %65 : vector<1x1x8x4xbf16> to vector<8x4xbf16>
    %67 = vector.shape_cast %64 : vector<8x4xbf16> to vector<1x1x8x4xbf16>
    tpu.vector_store %arg7[%c0_66, %c2_67, %c0_68, %c0_69], %67 {strides = array<i32>} : memref<1x8x8x4xbf16, #tpu.memory_space<vmem>>, vector<1x1x8x4xbf16>,
    %68 = arith.truncf %57 : vector<8x4xf32> to vector<8x4xbf16>
    %c0_70 = arith.constant 0 : index
    %c2_71 = arith.constant 2 : index
    %c0_72 = arith.constant 0 : index
    %c0_73 = arith.constant 0 : index
    %69 = vector.load %arg8[%c0_70, %c2_71, %c0_72, %c0_73] : memref<1x8x8x4xbf16, #tpu.memory_space<vmem>>, vector<1x1x8x4xbf16>
    %70 = vector.shape_cast %69 : vector<1x1x8x4xbf16> to vector<8x4xbf16>
    %71 = vector.shape_cast %68 : vector<8x4xbf16> to vector<1x1x8x4xbf16>
    tpu.vector_store %arg8[%c0_70, %c2_71, %c0_72, %c0_73], %71 {strides = array<i32>} : memref<1x8x8x4xbf16, #tpu.memory_space<vmem>>, vector<1x1x8x4xbf16>,
    %c3 = arith.constant 3 : index
    %c0_74 = arith.constant 0 : index
    %c0_75 = arith.constant 0 : index
    %72 = vector.load %arg3[%c3, %c0_74, %c0_75] : memref<8x32x4xbf16, #tpu.memory_space<vmem>>, vector<1x32x4xbf16>
    %73 = vector.shape_cast %72 : vector<1x32x4xbf16> to vector<32x4xbf16>
    %cst_76 = arith.constant dense<0.000000e+00> : vector<8x4xf32>
    %74 = tpu.matmul %2, %73, %cst_76 {dimension_numbers = #tpu.dot_dimension_numbers<[1], [0], [0], [1], [0, 0, 1, 1], [], []>} : vector<8x32xbf16>, vector<32x4xbf16>, vector<8x4xf32> -> vector<8x4xf32>
    %c3_77 = arith.constant 3 : index
    %c0_78 = arith.constant 0 : index
    %c0_79 = arith.constant 0 : index
    %75 = vector.load %arg4[%c3_77, %c0_78, %c0_79] : memref<8x32x4xbf16, #tpu.memory_space<vmem>>, vector<1x32x4xbf16>
    %76 = vector.shape_cast %75 : vector<1x32x4xbf16> to vector<32x4xbf16>
    %cst_80 = arith.constant dense<0.000000e+00> : vector<8x4xf32>
    %77 = tpu.matmul %2, %76, %cst_80 {dimension_numbers = #tpu.dot_dimension_numbers<[1], [0], [0], [1], [0, 0, 1, 1], [], []>} : vector<8x32xbf16>, vector<32x4xbf16>, vector<8x4xf32> -> vector<8x4xf32>
    %c3_81 = arith.constant 3 : index
    %c0_82 = arith.constant 0 : index
    %c0_83 = arith.constant 0 : index
    %78 = vector.load %arg5[%c3_81, %c0_82, %c0_83] : memref<8x32x4xbf16, #tpu.memory_space<vmem>>, vector<1x32x4xbf16>
    %79 = vector.shape_cast %78 : vector<1x32x4xbf16> to vector<32x4xbf16>
    %cst_84 = arith.constant dense<0.000000e+00> : vector<8x4xf32>
    %80 = tpu.matmul %2, %79, %cst_84 {dimension_numbers = #tpu.dot_dimension_numbers<[1], [0], [0], [1], [0, 0, 1, 1], [], []>} : vector<8x32xbf16>, vector<32x4xbf16>, vector<8x4xf32> -> vector<8x4xf32>
    %cst_85 = arith.constant 5.000000e-01 : f32
    %81 = vector.broadcast %cst_85 : f32 to vector<8x4xf32>
    %82 = arith.mulf %74, %81 : vector<8x4xf32>
    %83 = arith.truncf %82 : vector<8x4xf32> to vector<8x4xbf16>
    %c0_86 = arith.constant 0 : index
    %c3_87 = arith.constant 3 : index
    %c0_88 = arith.constant 0 : index
    %c0_89 = arith.constant 0 : index
    %84 = vector.load %arg6[%c0_86, %c3_87, %c0_88, %c0_89] : memref<1x8x8x4xbf16, #tpu.memory_space<vmem>>, vector<1x1x8x4xbf16>
    %85 = vector.shape_cast %84 : vector<1x1x8x4xbf16> to vector<8x4xbf16>
    %86 = vector.shape_cast %83 : vector<8x4xbf16> to vector<1x1x8x4xbf16>
    tpu.vector_store %arg6[%c0_86, %c3_87, %c0_88, %c0_89], %86 {strides = array<i32>} : memref<1x8x8x4xbf16, #tpu.memory_space<vmem>>, vector<1x1x8x4xbf16>,
    %87 = arith.truncf %77 : vector<8x4xf32> to vector<8x4xbf16>
    %c0_90 = arith.constant 0 : index
    %c3_91 = arith.constant 3 : index
    %c0_92 = arith.constant 0 : index
    %c0_93 = arith.constant 0 : index
    %88 = vector.load %arg7[%c0_90, %c3_91, %c0_92, %c0_93] : memref<1x8x8x4xbf16, #tpu.memory_space<vmem>>, vector<1x1x8x4xbf16>
    %89 = vector.shape_cast %88 : vector<1x1x8x4xbf16> to vector<8x4xbf16>
    %90 = vector.shape_cast %87 : vector<8x4xbf16> to vector<1x1x8x4xbf16>
    tpu.vector_store %arg7[%c0_90, %c3_91, %c0_92, %c0_93], %90 {strides = array<i32>} : memref<1x8x8x4xbf16, #tpu.memory_space<vmem>>, vector<1x1x8x4xbf16>,
    %91 = arith.truncf %80 : vector<8x4xf32> to vector<8x4xbf16>
    %c0_94 = arith.constant 0 : index
    %c3_95 = arith.constant 3 : index
    %c0_96 = arith.constant 0 : index
    %c0_97 = arith.constant 0 : index
    %92 = vector.load %arg8[%c0_94, %c3_95, %c0_96, %c0_97] : memref<1x8x8x4xbf16, #tpu.memory_space<vmem>>, vector<1x1x8x4xbf16>
    %93 = vector.shape_cast %92 : vector<1x1x8x4xbf16> to vector<8x4xbf16>
    %94 = vector.shape_cast %91 : vector<8x4xbf16> to vector<1x1x8x4xbf16>
    tpu.vector_store %arg8[%c0_94, %c3_95, %c0_96, %c0_97], %94 {strides = array<i32>} : memref<1x8x8x4xbf16, #tpu.memory_space<vmem>>, vector<1x1x8x4xbf16>,
    %c4 = arith.constant 4 : index
    %c0_98 = arith.constant 0 : index
    %c0_99 = arith.constant 0 : index
    %95 = vector.load %arg3[%c4, %c0_98, %c0_99] : memref<8x32x4xbf16, #tpu.memory_space<vmem>>, vector<1x32x4xbf16>
    %96 = vector.shape_cast %95 : vector<1x32x4xbf16> to vector<32x4xbf16>
    %cst_100 = arith.constant dense<0.000000e+00> : vector<8x4xf32>
    %97 = tpu.matmul %2, %96, %cst_100 {dimension_numbers = #tpu.dot_dimension_numbers<[1], [0], [0], [1], [0, 0, 1, 1], [], []>} : vector<8x32xbf16>, vector<32x4xbf16>, vector<8x4xf32> -> vector<8x4xf32>
    %c4_101 = arith.constant 4 : index
    %c0_102 = arith.constant 0 : index
    %c0_103 = arith.constant 0 : index
    %98 = vector.load %arg4[%c4_101, %c0_102, %c0_103] : memref<8x32x4xbf16, #tpu.memory_space<vmem>>, vector<1x32x4xbf16>
    %99 = vector.shape_cast %98 : vector<1x32x4xbf16> to vector<32x4xbf16>
    %cst_104 = arith.constant dense<0.000000e+00> : vector<8x4xf32>
    %100 = tpu.matmul %2, %99, %cst_104 {dimension_numbers = #tpu.dot_dimension_numbers<[1], [0], [0], [1], [0, 0, 1, 1], [], []>} : vector<8x32xbf16>, vector<32x4xbf16>, vector<8x4xf32> -> vector<8x4xf32>
    %c4_105 = arith.constant 4 : index
    %c0_106 = arith.constant 0 : index
    %c0_107 = arith.constant 0 : index
    %101 = vector.load %arg5[%c4_105, %c0_106, %c0_107] : memref<8x32x4xbf16, #tpu.memory_space<vmem>>, vector<1x32x4xbf16>
    %102 = vector.shape_cast %101 : vector<1x32x4xbf16> to vector<32x4xbf16>
    %cst_108 = arith.constant dense<0.000000e+00> : vector<8x4xf32>
    %103 = tpu.matmul %2, %102, %cst_108 {dimension_numbers = #tpu.dot_dimension_numbers<[1], [0], [0], [1], [0, 0, 1, 1], [], []>} : vector<8x32xbf16>, vector<32x4xbf16>, vector<8x4xf32> -> vector<8x4xf32>
    %cst_109 = arith.constant 5.000000e-01 : f32
    %104 = vector.broadcast %cst_109 : f32 to vector<8x4xf32>
    %105 = arith.mulf %97, %104 : vector<8x4xf32>
    %106 = arith.truncf %105 : vector<8x4xf32> to vector<8x4xbf16>
    %c0_110 = arith.constant 0 : index
    %c4_111 = arith.constant 4 : index
    %c0_112 = arith.constant 0 : index
    %c0_113 = arith.constant 0 : index
    %107 = vector.load %arg6[%c0_110, %c4_111, %c0_112, %c0_113] : memref<1x8x8x4xbf16, #tpu.memory_space<vmem>>, vector<1x1x8x4xbf16>
    %108 = vector.shape_cast %107 : vector<1x1x8x4xbf16> to vector<8x4xbf16>
    %109 = vector.shape_cast %106 : vector<8x4xbf16> to vector<1x1x8x4xbf16>
    tpu.vector_store %arg6[%c0_110, %c4_111, %c0_112, %c0_113], %109 {strides = array<i32>} : memref<1x8x8x4xbf16, #tpu.memory_space<vmem>>, vector<1x1x8x4xbf16>,
    %110 = arith.truncf %100 : vector<8x4xf32> to vector<8x4xbf16>
    %c0_114 = arith.constant 0 : index
    %c4_115 = arith.constant 4 : index
    %c0_116 = arith.constant 0 : index
    %c0_117 = arith.constant 0 : index
    %111 = vector.load %arg7[%c0_114, %c4_115, %c0_116, %c0_117] : memref<1x8x8x4xbf16, #tpu.memory_space<vmem>>, vector<1x1x8x4xbf16>
    %112 = vector.shape_cast %111 : vector<1x1x8x4xbf16> to vector<8x4xbf16>
    %113 = vector.shape_cast %110 : vector<8x4xbf16> to vector<1x1x8x4xbf16>
    tpu.vector_store %arg7[%c0_114, %c4_115, %c0_116, %c0_117], %113 {strides = array<i32>} : memref<1x8x8x4xbf16, #tpu.memory_space<vmem>>, vector<1x1x8x4xbf16>,
    %114 = arith.truncf %103 : vector<8x4xf32> to vector<8x4xbf16>
    %c0_118 = arith.constant 0 : index
    %c4_119 = arith.constant 4 : index
    %c0_120 = arith.constant 0 : index
    %c0_121 = arith.constant 0 : index
    %115 = vector.load %arg8[%c0_118, %c4_119, %c0_120, %c0_121] : memref<1x8x8x4xbf16, #tpu.memory_space<vmem>>, vector<1x1x8x4xbf16>
    %116 = vector.shape_cast %115 : vector<1x1x8x4xbf16> to vector<8x4xbf16>
    %117 = vector.shape_cast %114 : vector<8x4xbf16> to vector<1x1x8x4xbf16>
    tpu.vector_store %arg8[%c0_118, %c4_119, %c0_120, %c0_121], %117 {strides = array<i32>} : memref<1x8x8x4xbf16, #tpu.memory_space<vmem>>, vector<1x1x8x4xbf16>,
    %c5 = arith.constant 5 : index
    %c0_122 = arith.constant 0 : index
    %c0_123 = arith.constant 0 : index
    %118 = vector.load %arg3[%c5, %c0_122, %c0_123] : memref<8x32x4xbf16, #tpu.memory_space<vmem>>, vector<1x32x4xbf16>
    %119 = vector.shape_cast %118 : vector<1x32x4xbf16> to vector<32x4xbf16>
    %cst_124 = arith.constant dense<0.000000e+00> : vector<8x4xf32>
    %120 = tpu.matmul %2, %119, %cst_124 {dimension_numbers = #tpu.dot_dimension_numbers<[1], [0], [0], [1], [0, 0, 1, 1], [], []>} : vector<8x32xbf16>, vector<32x4xbf16>, vector<8x4xf32> -> vector<8x4xf32>
    %c5_125 = arith.constant 5 : index
    %c0_126 = arith.constant 0 : index
    %c0_127 = arith.constant 0 : index
    %121 = vector.load %arg4[%c5_125, %c0_126, %c0_127] : memref<8x32x4xbf16, #tpu.memory_space<vmem>>, vector<1x32x4xbf16>
    %122 = vector.shape_cast %121 : vector<1x32x4xbf16> to vector<32x4xbf16>
    %cst_128 = arith.constant dense<0.000000e+00> : vector<8x4xf32>
    %123 = tpu.matmul %2, %122, %cst_128 {dimension_numbers = #tpu.dot_dimension_numbers<[1], [0], [0], [1], [0, 0, 1, 1], [], []>} : vector<8x32xbf16>, vector<32x4xbf16>, vector<8x4xf32> -> vector<8x4xf32>
    %c5_129 = arith.constant 5 : index
    %c0_130 = arith.constant 0 : index
    %c0_131 = arith.constant 0 : index
    %124 = vector.load %arg5[%c5_129, %c0_130, %c0_131] : memref<8x32x4xbf16, #tpu.memory_space<vmem>>, vector<1x32x4xbf16>
    %125 = vector.shape_cast %124 : vector<1x32x4xbf16> to vector<32x4xbf16>
    %cst_132 = arith.constant dense<0.000000e+00> : vector<8x4xf32>
    %126 = tpu.matmul %2, %125, %cst_132 {dimension_numbers = #tpu.dot_dimension_numbers<[1], [0], [0], [1], [0, 0, 1, 1], [], []>} : vector<8x32xbf16>, vector<32x4xbf16>, vector<8x4xf32> -> vector<8x4xf32>
    %cst_133 = arith.constant 5.000000e-01 : f32
    %127 = vector.broadcast %cst_133 : f32 to vector<8x4xf32>
    %128 = arith.mulf %120, %127 : vector<8x4xf32>
    %129 = arith.truncf %128 : vector<8x4xf32> to vector<8x4xbf16>
    %c0_134 = arith.constant 0 : index
    %c5_135 = arith.constant 5 : index
    %c0_136 = arith.constant 0 : index
    %c0_137 = arith.constant 0 : index
    %130 = vector.load %arg6[%c0_134, %c5_135, %c0_136, %c0_137] : memref<1x8x8x4xbf16, #tpu.memory_space<vmem>>, vector<1x1x8x4xbf16>
    %131 = vector.shape_cast %130 : vector<1x1x8x4xbf16> to vector<8x4xbf16>
    %132 = vector.shape_cast %129 : vector<8x4xbf16> to vector<1x1x8x4xbf16>
    tpu.vector_store %arg6[%c0_134, %c5_135, %c0_136, %c0_137], %132 {strides = array<i32>} : memref<1x8x8x4xbf16, #tpu.memory_space<vmem>>, vector<1x1x8x4xbf16>,
    %133 = arith.truncf %123 : vector<8x4xf32> to vector<8x4xbf16>
    %c0_138 = arith.constant 0 : index
    %c5_139 = arith.constant 5 : index
    %c0_140 = arith.constant 0 : index
    %c0_141 = arith.constant 0 : index
    %134 = vector.load %arg7[%c0_138, %c5_139, %c0_140, %c0_141] : memref<1x8x8x4xbf16, #tpu.memory_space<vmem>>, vector<1x1x8x4xbf16>
    %135 = vector.shape_cast %134 : vector<1x1x8x4xbf16> to vector<8x4xbf16>
    %136 = vector.shape_cast %133 : vector<8x4xbf16> to vector<1x1x8x4xbf16>
    tpu.vector_store %arg7[%c0_138, %c5_139, %c0_140, %c0_141], %136 {strides = array<i32>} : memref<1x8x8x4xbf16, #tpu.memory_space<vmem>>, vector<1x1x8x4xbf16>,
    %137 = arith.truncf %126 : vector<8x4xf32> to vector<8x4xbf16>
    %c0_142 = arith.constant 0 : index
    %c5_143 = arith.constant 5 : index
    %c0_144 = arith.constant 0 : index
    %c0_145 = arith.constant 0 : index
    %138 = vector.load %arg8[%c0_142, %c5_143, %c0_144, %c0_145] : memref<1x8x8x4xbf16, #tpu.memory_space<vmem>>, vector<1x1x8x4xbf16>
    %139 = vector.shape_cast %138 : vector<1x1x8x4xbf16> to vector<8x4xbf16>
    %140 = vector.shape_cast %137 : vector<8x4xbf16> to vector<1x1x8x4xbf16>
    tpu.vector_store %arg8[%c0_142, %c5_143, %c0_144, %c0_145], %140 {strides = array<i32>} : memref<1x8x8x4xbf16, #tpu.memory_space<vmem>>, vector<1x1x8x4xbf16>,
    %c6 = arith.constant 6 : index
    %c0_146 = arith.constant 0 : index
    %c0_147 = arith.constant 0 : index
    %141 = vector.load %arg3[%c6, %c0_146, %c0_147] : memref<8x32x4xbf16, #tpu.memory_space<vmem>>, vector<1x32x4xbf16>
    %142 = vector.shape_cast %141 : vector<1x32x4xbf16> to vector<32x4xbf16>
    %cst_148 = arith.constant dense<0.000000e+00> : vector<8x4xf32>
    %143 = tpu.matmul %2, %142, %cst_148 {dimension_numbers = #tpu.dot_dimension_numbers<[1], [0], [0], [1], [0, 0, 1, 1], [], []>} : vector<8x32xbf16>, vector<32x4xbf16>, vector<8x4xf32> -> vector<8x4xf32>
    %c6_149 = arith.constant 6 : index
    %c0_150 = arith.constant 0 : index
    %c0_151 = arith.constant 0 : index
    %144 = vector.load %arg4[%c6_149, %c0_150, %c0_151] : memref<8x32x4xbf16, #tpu.memory_space<vmem>>, vector<1x32x4xbf16>
    %145 = vector.shape_cast %144 : vector<1x32x4xbf16> to vector<32x4xbf16>
    %cst_152 = arith.constant dense<0.000000e+00> : vector<8x4xf32>
    %146 = tpu.matmul %2, %145, %cst_152 {dimension_numbers = #tpu.dot_dimension_numbers<[1], [0], [0], [1], [0, 0, 1, 1], [], []>} : vector<8x32xbf16>, vector<32x4xbf16>, vector<8x4xf32> -> vector<8x4xf32>
    %c6_153 = arith.constant 6 : index
    %c0_154 = arith.constant 0 : index
    %c0_155 = arith.constant 0 : index
    %147 = vector.load %arg5[%c6_153, %c0_154, %c0_155] : memref<8x32x4xbf16, #tpu.memory_space<vmem>>, vector<1x32x4xbf16>
    %148 = vector.shape_cast %147 : vector<1x32x4xbf16> to vector<32x4xbf16>
    %cst_156 = arith.constant dense<0.000000e+00> : vector<8x4xf32>
    %149 = tpu.matmul %2, %148, %cst_156 {dimension_numbers = #tpu.dot_dimension_numbers<[1], [0], [0], [1], [0, 0, 1, 1], [], []>} : vector<8x32xbf16>, vector<32x4xbf16>, vector<8x4xf32> -> vector<8x4xf32>
    %cst_157 = arith.constant 5.000000e-01 : f32
    %150 = vector.broadcast %cst_157 : f32 to vector<8x4xf32>
    %151 = arith.mulf %143, %150 : vector<8x4xf32>
    %152 = arith.truncf %151 : vector<8x4xf32> to vector<8x4xbf16>
    %c0_158 = arith.constant 0 : index
    %c6_159 = arith.constant 6 : index
    %c0_160 = arith.constant 0 : index
    %c0_161 = arith.constant 0 : index
    %153 = vector.load %arg6[%c0_158, %c6_159, %c0_160, %c0_161] : memref<1x8x8x4xbf16, #tpu.memory_space<vmem>>, vector<1x1x8x4xbf16>
    %154 = vector.shape_cast %153 : vector<1x1x8x4xbf16> to vector<8x4xbf16>
    %155 = vector.shape_cast %152 : vector<8x4xbf16> to vector<1x1x8x4xbf16>
    tpu.vector_store %arg6[%c0_158, %c6_159, %c0_160, %c0_161], %155 {strides = array<i32>} : memref<1x8x8x4xbf16, #tpu.memory_space<vmem>>, vector<1x1x8x4xbf16>,
    %156 = arith.truncf %146 : vector<8x4xf32> to vector<8x4xbf16>
    %c0_162 = arith.constant 0 : index
    %c6_163 = arith.constant 6 : index
    %c0_164 = arith.constant 0 : index
    %c0_165 = arith.constant 0 : index
    %157 = vector.load %arg7[%c0_162, %c6_163, %c0_164, %c0_165] : memref<1x8x8x4xbf16, #tpu.memory_space<vmem>>, vector<1x1x8x4xbf16>
    %158 = vector.shape_cast %157 : vector<1x1x8x4xbf16> to vector<8x4xbf16>
    %159 = vector.shape_cast %156 : vector<8x4xbf16> to vector<1x1x8x4xbf16>
    tpu.vector_store %arg7[%c0_162, %c6_163, %c0_164, %c0_165], %159 {strides = array<i32>} : memref<1x8x8x4xbf16, #tpu.memory_space<vmem>>, vector<1x1x8x4xbf16>,
    %160 = arith.truncf %149 : vector<8x4xf32> to vector<8x4xbf16>
    %c0_166 = arith.constant 0 : index
    %c6_167 = arith.constant 6 : index
    %c0_168 = arith.constant 0 : index
    %c0_169 = arith.constant 0 : index
    %161 = vector.load %arg8[%c0_166, %c6_167, %c0_168, %c0_169] : memref<1x8x8x4xbf16, #tpu.memory_space<vmem>>, vector<1x1x8x4xbf16>
    %162 = vector.shape_cast %161 : vector<1x1x8x4xbf16> to vector<8x4xbf16>
    %163 = vector.shape_cast %160 : vector<8x4xbf16> to vector<1x1x8x4xbf16>
    tpu.vector_store %arg8[%c0_166, %c6_167, %c0_168, %c0_169], %163 {strides = array<i32>} : memref<1x8x8x4xbf16, #tpu.memory_space<vmem>>, vector<1x1x8x4xbf16>,
    %c7 = arith.constant 7 : index
    %c0_170 = arith.constant 0 : index
    %c0_171 = arith.constant 0 : index
    %164 = vector.load %arg3[%c7, %c0_170, %c0_171] : memref<8x32x4xbf16, #tpu.memory_space<vmem>>, vector<1x32x4xbf16>
    %165 = vector.shape_cast %164 : vector<1x32x4xbf16> to vector<32x4xbf16>
    %cst_172 = arith.constant dense<0.000000e+00> : vector<8x4xf32>
    %166 = tpu.matmul %2, %165, %cst_172 {dimension_numbers = #tpu.dot_dimension_numbers<[1], [0], [0], [1], [0, 0, 1, 1], [], []>} : vector<8x32xbf16>, vector<32x4xbf16>, vector<8x4xf32> -> vector<8x4xf32>
    %c7_173 = arith.constant 7 : index
    %c0_174 = arith.constant 0 : index
    %c0_175 = arith.constant 0 : index
    %167 = vector.load %arg4[%c7_173, %c0_174, %c0_175] : memref<8x32x4xbf16, #tpu.memory_space<vmem>>, vector<1x32x4xbf16>
    %168 = vector.shape_cast %167 : vector<1x32x4xbf16> to vector<32x4xbf16>
    %cst_176 = arith.constant dense<0.000000e+00> : vector<8x4xf32>
    %169 = tpu.matmul %2, %168, %cst_176 {dimension_numbers = #tpu.dot_dimension_numbers<[1], [0], [0], [1], [0, 0, 1, 1], [], []>} : vector<8x32xbf16>, vector<32x4xbf16>, vector<8x4xf32> -> vector<8x4xf32>
    %c7_177 = arith.constant 7 : index
    %c0_178 = arith.constant 0 : index
    %c0_179 = arith.constant 0 : index
    %170 = vector.load %arg5[%c7_177, %c0_178, %c0_179] : memref<8x32x4xbf16, #tpu.memory_space<vmem>>, vector<1x32x4xbf16>
    %171 = vector.shape_cast %170 : vector<1x32x4xbf16> to vector<32x4xbf16>
    %cst_180 = arith.constant dense<0.000000e+00> : vector<8x4xf32>
    %172 = tpu.matmul %2, %171, %cst_180 {dimension_numbers = #tpu.dot_dimension_numbers<[1], [0], [0], [1], [0, 0, 1, 1], [], []>} : vector<8x32xbf16>, vector<32x4xbf16>, vector<8x4xf32> -> vector<8x4xf32>
    %cst_181 = arith.constant 5.000000e-01 : f32
    %173 = vector.broadcast %cst_181 : f32 to vector<8x4xf32>
    %174 = arith.mulf %166, %173 : vector<8x4xf32>
    %175 = arith.truncf %174 : vector<8x4xf32> to vector<8x4xbf16>
    %c0_182 = arith.constant 0 : index
    %c7_183 = arith.constant 7 : index
    %c0_184 = arith.constant 0 : index
    %c0_185 = arith.constant 0 : index
    %176 = vector.load %arg6[%c0_182, %c7_183, %c0_184, %c0_185] : memref<1x8x8x4xbf16, #tpu.memory_space<vmem>>, vector<1x1x8x4xbf16>
    %177 = vector.shape_cast %176 : vector<1x1x8x4xbf16> to vector<8x4xbf16>
    %178 = vector.shape_cast %175 : vector<8x4xbf16> to vector<1x1x8x4xbf16>
    tpu.vector_store %arg6[%c0_182, %c7_183, %c0_184, %c0_185], %178 {strides = array<i32>} : memref<1x8x8x4xbf16, #tpu.memory_space<vmem>>, vector<1x1x8x4xbf16>,
    %179 = arith.truncf %169 : vector<8x4xf32> to vector<8x4xbf16>
    %c0_186 = arith.constant 0 : index
    %c7_187 = arith.constant 7 : index
    %c0_188 = arith.constant 0 : index
    %c0_189 = arith.constant 0 : index
    %180 = vector.load %arg7[%c0_186, %c7_187, %c0_188, %c0_189] : memref<1x8x8x4xbf16, #tpu.memory_space<vmem>>, vector<1x1x8x4xbf16>
    %181 = vector.shape_cast %180 : vector<1x1x8x4xbf16> to vector<8x4xbf16>
    %182 = vector.shape_cast %179 : vector<8x4xbf16> to vector<1x1x8x4xbf16>
    tpu.vector_store %arg7[%c0_186, %c7_187, %c0_188, %c0_189], %182 {strides = array<i32>} : memref<1x8x8x4xbf16, #tpu.memory_space<vmem>>, vector<1x1x8x4xbf16>,
    %183 = arith.truncf %172 : vector<8x4xf32> to vector<8x4xbf16>
    %c0_190 = arith.constant 0 : index
    %c7_191 = arith.constant 7 : index
    %c0_192 = arith.constant 0 : index
    %c0_193 = arith.constant 0 : index
    %184 = vector.load %arg8[%c0_190, %c7_191, %c0_192, %c0_193] : memref<1x8x8x4xbf16, #tpu.memory_space<vmem>>, vector<1x1x8x4xbf16>
    %185 = vector.shape_cast %184 : vector<1x1x8x4xbf16> to vector<8x4xbf16>
    %186 = vector.shape_cast %183 : vector<8x4xbf16> to vector<1x1x8x4xbf16>
    tpu.vector_store %arg8[%c0_190, %c7_191, %c0_192, %c0_193], %186 {strides = array<i32>} : memref<1x8x8x4xbf16, #tpu.memory_space<vmem>>, vector<1x1x8x4xbf16>,
    return
  }
  func.func @transform_0(%arg0: i32, %arg1: i32) -> (i32, i32, i32) {
    %c0_i32 = arith.constant 0 : i32
    %c0_i32_0 = arith.constant 0 : i32
    return %arg0, %arg1, %c0_i32 : i32, i32, i32
  }
  func.func @transform_1(%arg0: i32, %arg1: i32) -> (i32, i32, i32) {
    %c0_i32 = arith.constant 0 : i32
    %c0_i32_0 = arith.constant 0 : i32
    %c0_i32_1 = arith.constant 0 : i32
    %c0_i32_2 = arith.constant 0 : i32
    return %c0_i32, %c0_i32_0, %c0_i32_1 : i32, i32, i32
  }
  func.func @transform_2(%arg0: i32, %arg1: i32) -> (i32, i32, i32) {
    %c0_i32 = arith.constant 0 : i32
    %c0_i32_0 = arith.constant 0 : i32
    %c0_i32_1 = arith.constant 0 : i32
    %c0_i32_2 = arith.constant 0 : i32
    return %c0_i32, %c0_i32_0, %c0_i32_1 : i32, i32, i32
  }
  func.func @transform_3(%arg0: i32, %arg1: i32) -> (i32, i32, i32) {
    %c0_i32 = arith.constant 0 : i32
    %c0_i32_0 = arith.constant 0 : i32
    %c0_i32_1 = arith.constant 0 : i32
    %c0_i32_2 = arith.constant 0 : i32
    return %c0_i32, %c0_i32_0, %c0_i32_1 : i32, i32, i32
  }
  func.func @transform_4(%arg0: i32, %arg1: i32) -> (i32, i32, i32, i32) {
    %c0_i32 = arith.constant 0 : i32
    %c0_i32_0 = arith.constant 0 : i32
    %c0_i32_1 = arith.constant 0 : i32
    return %arg0, %c0_i32, %arg1, %c0_i32_0 : i32, i32, i32, i32
  }
  func.func @transform_5(%arg0: i32, %arg1: i32) -> (i32, i32, i32, i32) {
    %c0_i32 = arith.constant 0 : i32
    %c0_i32_0 = arith.constant 0 : i32
    %c0_i32_1 = arith.constant 0 : i32
    return %arg0, %c0_i32, %arg1, %c0_i32_0 : i32, i32, i32, i32
  }
  func.func @transform_6(%arg0: i32, %arg1: i32) -> (i32, i32, i32, i32) {
    %c0_i32 = arith.constant 0 : i32
    %c0_i32_0 = arith.constant 0 : i32
    %c0_i32_1 = arith.constant 0 : i32
    return %arg0, %c0_i32, %arg1, %c0_i32_0 : i32, i32, i32, i32
  }
}

</mosaic_0001>

<bundles_post_ra>
// kernel: tpu_custom_call.1
= control target key start
LH: loop header
LB: loop body
LE: loop exit
PB: predicated region body
PF: predicated region fallthrough
CT: control target
= control target key end

     0   :  { %s2538_s21 = smov 0   ;;  %s2540_s22 = smov 0   ;;  %s2925_s0 = inlined_call_operand.vmem [shape: f32[2,8,32], index: 0, kind: input, shape index: {}]   ;;  %s2926_s1 = inlined_call_operand.vmem [shape: bf16[8,32,4], index: 1, kind: input, shape index: {}]   ;;  %s2927_s2 = inlined_call_operand.vmem [shape: bf16[8,32,4], index: 2, kind: input, shape index: {}]   ;;  %s2928_s3 = inlined_call_operand.vmem [shape: bf16[8,32,4], index: 3, kind: input, shape index: {}]   ;;  %s2929_s4 = inlined_call_operand.vmem [shape: bf16[2,8,8,4], index: 4, kind: output, shape index: {0}]   ;;  %s2930_s5 = inlined_call_operand.vmem [shape: bf16[2,8,8,4], index: 5, kind: output, shape index: {1}]   ;;  %s2931_s6 = inlined_call_operand.vmem [shape: bf16[2,8,8,4], index: 6, kind: output, shape index: {2}]  }
   0x1   :  { %s2542_s23 = smov 0  }
   0x2 LB: > { %s29_s24 = sadd.s32 1, %s2495_s22  ;;  %p1949_p0 = scmp.ge.s32.totalorder %s2499_s23, 1  ;;  %s2499_s23 = sphi %s2542_s23, %s17_s23   ;;  %s2495_s22 = sphi %s2540_s22, %s2933_s22   ;;  %s2491_s21 = sphi %s2538_s21, %s2932_s21  }
   0x3   : > { %p31_p1 = scmp.ge.s32.totalorder %s29_s24, 2  ;;  %p239_p2 = scmp.lt.s32.totalorder %s2499_s23, 3 }
   0x5   : > { %s2935_s24 = smov (%p31_p1, %s29_s24), 0  ;;  %p240_p3 = pnand %p1949_p0, %p239_p2 }
   0x6   : > { %v2429_v0 = vld [vmem:[%s2926_s1] sm:$0xff] (!%p240_p3)   ;;  %v2501_v1 = vmov (!%p240_p3), 0.0   ;;  %v2431_v3 = vld [vmem:[%s2926_s1 + $0x8] sm:$0xff] (!%p240_p3)   ;;  %vm2502_vm0 = vmmov (!%p240_p3), 0   ;;  %p290_p4 = scmp.lt.s32.totalorder (!%p240_p3), %s2491_s21, 1  ;;  %v2434_v6 = vld [vmem:[%s2926_s1 + $0x10] sm:$0xff] (!%p240_p3)  }
   0x7   : > { %243 = sbr.rel (%p240_p3) target bundleno = 323 (0x143), region = 36  ;;  %2211 = vmatprep.subr.bf16.mxu0 (!%p240_p3), %v2501_v1  ;;  %2219 = vmatprep.subr.bf16.mxu1 (!%p240_p3), %v2501_v1  ;;  %v2430_v2 = vld [vmem:[%s2927_s2] sm:$0xff] (!%p240_p3)   ;;  %v2432_v4 = vld [vmem:[%s2927_s2 + $0x8] sm:$0xff] (!%p240_p3)   ;;  %vm340_vm1 = vcmask (!%p240_p3), 261120   ;;  %v2436_v10 = vld [vmem:[%s2926_s1 + $0x18] sm:$0xff] (!%p240_p3)   ;;  %vm498_vm2 = vcmask (!%p240_p3), 27648  }
   0x8   : > { %2212 = vmatpush3.bf16.msra.mxu0 (!%p240_p3), %v2429_v0  ;;  %2215 = vmatprep.mubr.msk.bf16.mxu0 (!%p240_p3), %vm2502_vm0, %v2501_v1  ;;  %v2433_v5 = vld [vmem:[%s2928_s3] sm:$0xff] (!%p240_p3)   ;;  %v2435_v9 = vld [vmem:[%s2928_s3 + $0x8] sm:$0xff] (!%p240_p3)   ;;  %v2437_v11 = vld [vmem:[%s2927_s2 + $0x10] sm:$0xff] (!%p240_p3)  }
   0x9   : > { %2220 = vmatpush3.bf16.msra.mxu1 (!%p240_p3), %v2430_v2  ;;  %2213 = vmatprep.subr.bf16.mxu0 (!%p240_p3), %v2501_v1  ;;  %v2438_v12 = vld [vmem:[%s2928_s3 + $0x10] sm:$0xff] (!%p240_p3)   ;;  %v2439_v13 = vld [vmem:[%s2927_s2 + $0x18] sm:$0xff] (!%p240_p3)   ;;  %v2441_v15 = vld [vmem:[%s2926_s1 + $0x20] sm:$0xff] (!%p240_p3)  }
   0xa   : > { %2221 = vmatprep.subr.bf16.mxu1 (!%p240_p3), %v2501_v1  ;;  %2223 = vmatprep.mubr.msk.bf16.mxu1 (!%p240_p3), %vm2502_vm0, %v2501_v1  ;;  %v2440_v14 = vld [vmem:[%s2928_s3 + $0x18] sm:$0xff] (!%p240_p3)   ;;  %v2442_v16 = vld [vmem:[%s2927_s2 + $0x20] sm:$0xff] (!%p240_p3)   ;;  %v2443_v17 = vld [vmem:[%s2926_s1 + $0x28] sm:$0xff] (!%p240_p3)  }
   0xb   : > { %v2444_v18 = vld [vmem:[%s2927_s2 + $0x28] sm:$0xff] (!%p240_p3)   ;;  %v2445_v19 = vld [vmem:[%s2928_s3 + $0x20] sm:$0xff] (!%p240_p3)   ;;  %v2446_v20 = vld [vmem:[%s2926_s1 + $0x30] sm:$0xff] (!%p240_p3)  }
   0xc   : > { %2214 = vmatpush3.bf16.msra.mxu0 (!%p240_p3), %v2431_v3  ;;  %v2447_v21 = vld [vmem:[%s2928_s3 + $0x28] sm:$0xff] (!%p240_p3)   ;;  %v2448_v22 = vld [vmem:[%s2926_s1 + $0x38] sm:$0xff] (!%p240_p3)   ;;  %v2449_v23 = vld [vmem:[%s2927_s2 + $0x30] sm:$0xff] (!%p240_p3)  }
   0xd   : > { %2222 = vmatpush3.bf16.msra.mxu1 (!%p240_p3), %v2432_v4  ;;  %2227 = vmatprep.subr.bf16.mxu0 (!%p240_p3), %v2501_v1  ;;  %v2450_v24 = vld [vmem:[%s2928_s3 + $0x30] sm:$0xff] (!%p240_p3)   ;;  %v2451_v25 = vld [vmem:[%s2927_s2 + $0x38] sm:$0xff] (!%p240_p3)   ;;  %v2453_v27 = vld [vmem:[%s2926_s1 + $0x40] sm:$0xff] (!%p240_p3)  }
   0xe   : > { %s2937_s21 = smov (!%p290_p4, %s2491_s21), 1  ;;  %2235 = vmatprep.subr.bf16.mxu1 %v2501_v1  ;;  %v2452_v26 = vld [vmem:[%s2928_s3 + $0x38] sm:$0xff]   ;;  %v2454_v28 = vld [vmem:[%s2927_s2 + $0x40] sm:$0xff]   ;;  %v2455_v29 = vld [vmem:[%s2926_s1 + $0x48] sm:$0xff]  }
   0xf   : > { %s1950_s9 = sshll.u32 %s2937_s21, 3  ;;  %v2456_v30 = vld [vmem:[%s2927_s2 + $0x48] sm:$0xff]   ;;  %v2457_v31 = vld [vmem:[%s2928_s3 + $0x40] sm:$0xff]   ;;  %v2458_v32 = vld [vmem:[%s2926_s1 + $0x50] sm:$0xff]   ;;  %s2136_s25 = sshll.u32 %s2937_s21, 5 }
  0x10   : > { %s296_s14 = scalar_lea.vmem %s2925_s0, %s1950_s9  ;;  %v2459_v33 = vld [vmem:[%s2928_s3 + $0x48] sm:$0xff]   ;;  %v2460_v34 = vld [vmem:[%s2926_s1 + $0x58] sm:$0xff]   ;;  %v2461_v35 = vld [vmem:[%s2927_s2 + $0x50] sm:$0xff]   ;;  %s2856_s28 = scalar_lea.vmem %s2930_s5, %s2136_s25 }
  0x11   : > { %v322_v7 = vld [vmem:[%s296_s14] sm:$0xff]  ;;  %v2462_v36 = vld [vmem:[%s2928_s3 + $0x50] sm:$0xff]   ;;  %v2463_v37 = vld [vmem:[%s2927_s2 + $0x58] sm:$0xff]   ;;  %s2861_s7 = scalar_lea.vmem %s2929_s4, %s2136_s25  ;;  %s2870_s9 = scalar_lea.vmem %s2931_s6, %s2136_s25 }
  0x12   : > { %v2590_v8 = vpack.c.bf16 %v322_v7, %v322_v7  ;;  %v2464_v38 = vld [vmem:[%s2928_s3 + $0x58] sm:$0xff]   ;;  %v2465_v39 = vld [vmem:[%s2926_s1 + $0x60] sm:$0xff]   ;;  %v2467_v41 = vld [vmem:[%s2926_s1 + $0x68] sm:$0xff]  }
  0x13   : > { %v2466_v40 = vld [vmem:[%s2927_s2 + $0x60] sm:$0xff]   ;;  %v2468_v42 = vld [vmem:[%s2927_s2 + $0x68] sm:$0xff]   ;;  %v2470_v44 = vld [vmem:[%s2926_s1 + $0x70] sm:$0xff]  }
  0x14   : > { %2216 = vmatmul.mubr.msk.bf16.vlgmr.msra.gmra.mrb[0].mxu0 %vm340_vm1, %v2590_v8  ;;  %2224 = vmatmul.mubr.msk.bf16.vlgmr.msra.gmra.mrb[0].mxu1 %vm340_vm1, %v2590_v8  ;;  %v2469_v43 = vld [vmem:[%s2928_s3 + $0x60] sm:$0xff]   ;;  %v2471_v45 = vld [vmem:[%s2928_s3 + $0x68] sm:$0xff]   ;;  %v2472_v46 = vld [vmem:[%s2926_s1 + $0x78] sm:$0xff]  }
  0x15   : > { %2228 = vmatpush3.bf16.msra.mxu0 %v2433_v5  ;;  %2236 = vmatpush3.bf16.msra.mxu1 %v2434_v6  ;;  %v2473_v47 = vld [vmem:[%s2927_s2 + $0x70] sm:$0xff]   ;;  %v2475_v49 = vld [vmem:[%s2927_s2 + $0x78] sm:$0xff]  }
  0x16   : > { %2229 = vmatprep.subr.bf16.mxu0 %v2501_v1  ;;  %2237 = vmatprep.subr.bf16.mxu1 %v2501_v1  ;;  %v2474_v48 = vld [vmem:[%s2928_s3 + $0x70] sm:$0xff]   ;;  %v2476_v50 = vld [vmem:[%s2928_s3 + $0x78] sm:$0xff]  }
  0x17   : > { %2231 = vmatprep.mubr.msk.bf16.mxu0 %vm2502_vm0, %v2501_v1  ;;  %2239 = vmatprep.mubr.msk.bf16.mxu1 %vm2502_vm0, %v2501_v1 }
  0x19   : > { %2230 = vmatpush3.bf16.msra.mxu0 %v2435_v9  ;;  %2238 = vmatpush3.bf16.msra.mxu1 %v2436_v10 }
  0x1a   : > { %2243 = vmatprep.subr.bf16.mxu0 %v2501_v1  ;;  %2251 = vmatprep.subr.bf16.mxu1 %v2501_v1 }
  0x1c   : > { %2232 = vmatmul.mubr.msk.bf16.vlgmr.msra.gmra.mrb[4].mxu0 %vm340_vm1, %v2590_v8  ;;  %2240 = vmatmul.mubr.msk.bf16.vlgmr.msra.gmra.mrb[4].mxu1 %vm340_vm1, %v2590_v8 }
  0x1d   : > { %2244 = vmatpush3.bf16.msra.mxu0 %v2437_v11  ;;  %2252 = vmatpush3.bf16.msra.mxu1 %v2438_v12 }
  0x1e   : > { %2245 = vmatprep.subr.bf16.mxu0 %v2501_v1  ;;  %2253 = vmatprep.subr.bf16.mxu1 %v2501_v1 }
  0x1f   : > { %2247 = vmatprep.mubr.msk.bf16.mxu0 %vm2502_vm0, %v2501_v1  ;;  %2255 = vmatprep.mubr.msk.bf16.mxu1 %vm2502_vm0, %v2501_v1 }
  0x21   : > { %2246 = vmatpush3.bf16.msra.mxu0 %v2439_v13  ;;  %2254 = vmatpush3.bf16.msra.mxu1 %v2440_v14 }
  0x22   : > { %2259 = vmatprep.subr.bf16.mxu0 %v2501_v1  ;;  %2267 = vmatprep.subr.bf16.mxu1 %v2501_v1 }
  0x24   : > { %2248 = vmatmul.mubr.msk.bf16.vlgmr.msra.gmra.mrb[8].mxu0 %vm340_vm1, %v2590_v8  ;;  %2256 = vmatmul.mubr.msk.bf16.vlgmr.msra.gmra.mrb[8].mxu1 %vm340_vm1, %v2590_v8 }
  0x25   : > { %2260 = vmatpush3.bf16.msra.mxu0 %v2441_v15  ;;  %2268 = vmatpush3.bf16.msra.mxu1 %v2442_v16 }
  0x26   : > { %2261 = vmatprep.subr.bf16.mxu0 %v2501_v1  ;;  %2269 = vmatprep.subr.bf16.mxu1 %v2501_v1 }
  0x27   : > { %2263 = vmatprep.mubr.msk.bf16.mxu0 %vm2502_vm0, %v2501_v1  ;;  %2271 = vmatprep.mubr.msk.bf16.mxu1 %vm2502_vm0, %v2501_v1 }
  0x29   : > { %2262 = vmatpush3.bf16.msra.mxu0 %v2443_v17  ;;  %2270 = vmatpush3.bf16.msra.mxu1 %v2444_v18 }
  0x2a   : > { %2275 = vmatprep.subr.bf16.mxu0 %v2501_v1  ;;  %2283 = vmatprep.subr.bf16.mxu1 %v2501_v1 }
  0x2c   : > { %2264 = vmatmul.mubr.msk.bf16.vlgmr.msra.gmra.mrb[12].mxu0 %vm340_vm1, %v2590_v8  ;;  %2272 = vmatmul.mubr.msk.bf16.vlgmr.msra.gmra.mrb[12].mxu1 %vm340_vm1, %v2590_v8 }
  0x2d   : > { %2276 = vmatpush3.bf16.msra.mxu0 %v2445_v19  ;;  %2284 = vmatpush3.bf16.msra.mxu1 %v2446_v20 }
  0x2e   : > { %2277 = vmatprep.subr.bf16.mxu0 %v2501_v1  ;;  %2285 = vmatprep.subr.bf16.mxu1 %v2501_v1 }
  0x2f   : > { %2279 = vmatprep.mubr.msk.bf16.mxu0 %vm2502_vm0, %v2501_v1  ;;  %2287 = vmatprep.mubr.msk.bf16.mxu1 %vm2502_vm0, %v2501_v1 }
  0x31   : > { %2278 = vmatpush3.bf16.msra.mxu0 %v2447_v21  ;;  %2286 = vmatpush3.bf16.msra.mxu1 %v2448_v22 }
  0x32   : > { %2291 = vmatprep.subr.bf16.mxu0 %v2501_v1  ;;  %2299 = vmatprep.subr.bf16.mxu1 %v2501_v1 }
  0x34   : > { %2280 = vmatmul.mubr.msk.bf16.vlgmr.msra.gmra.mrb[16].mxu0 %vm340_vm1, %v2590_v8  ;;  %2288 = vmatmul.mubr.msk.bf16.vlgmr.msra.gmra.mrb[16].mxu1 %vm340_vm1, %v2590_v8 }
  0x35   : > { %2292 = vmatpush3.bf16.msra.mxu0 %v2449_v23  ;;  %2300 = vmatpush3.bf16.msra.mxu1 %v2450_v24 }
  0x36   : > { %2293 = vmatprep.subr.bf16.mxu0 %v2501_v1  ;;  %2301 = vmatprep.subr.bf16.mxu1 %v2501_v1 }
  0x37   : > { %2295 = vmatprep.mubr.msk.bf16.mxu0 %vm2502_vm0, %v2501_v1  ;;  %2303 = vmatprep.mubr.msk.bf16.mxu1 %vm2502_vm0, %v2501_v1 }
  0x39   : > { %2294 = vmatpush3.bf16.msra.mxu0 %v2451_v25  ;;  %2302 = vmatpush3.bf16.msra.mxu1 %v2452_v26 }
  0x3a   : > { %2307 = vmatprep.subr.bf16.mxu0 %v2501_v1  ;;  %2315 = vmatprep.subr.bf16.mxu1 %v2501_v1 }
  0x3c   : > { %2296 = vmatmul.mubr.msk.bf16.vlgmr.msra.gmra.mrb[20].mxu0 %vm340_vm1, %v2590_v8  ;;  %2304 = vmatmul.mubr.msk.bf16.vlgmr.msra.gmra.mrb[20].mxu1 %vm340_vm1, %v2590_v8 }
  0x3d   : > { %2308 = vmatpush3.bf16.msra.mxu0 %v2453_v27  ;;  %2316 = vmatpush3.bf16.msra.mxu1 %v2454_v28 }
  0x3e   : > { %2309 = vmatprep.subr.bf16.mxu0 %v2501_v1  ;;  %2317 = vmatprep.subr.bf16.mxu1 %v2501_v1 }
  0x3f   : > { %2311 = vmatprep.mubr.msk.bf16.mxu0 %vm2502_vm0, %v2501_v1  ;;  %2319 = vmatprep.mubr.msk.bf16.mxu1 %vm2502_vm0, %v2501_v1 }
  0x41   : > { %2310 = vmatpush3.bf16.msra.mxu0 %v2455_v29  ;;  %2318 = vmatpush3.bf16.msra.mxu1 %v2456_v30 }
  0x42   : > { %2323 = vmatprep.subr.bf16.mxu0 %v2501_v1  ;;  %2331 = vmatprep.subr.bf16.mxu1 %v2501_v1 }
  0x44   : > { %2312 = vmatmul.mubr.msk.bf16.vlgmr.msra.gmra.mrb[24].mxu0 %vm340_vm1, %v2590_v8  ;;  %2320 = vmatmul.mubr.msk.bf16.vlgmr.msra.gmra.mrb[24].mxu1 %vm340_vm1, %v2590_v8 }
  0x45   : > { %2324 = vmatpush3.bf16.msra.mxu0 %v2457_v31  ;;  %2332 = vmatpush3.bf16.msra.mxu1 %v2458_v32 }
  0x46   : > { %2325 = vmatprep.subr.bf16.mxu0 %v2501_v1  ;;  %2333 = vmatprep.subr.bf16.mxu1 %v2501_v1 }
  0x47   : > { %2327 = vmatprep.mubr.msk.bf16.mxu0 %vm2502_vm0, %v2501_v1  ;;  %2335 = vmatprep.mubr.msk.bf16.mxu1 %vm2502_vm0, %v2501_v1 }
  0x49   : > { %2326 = vmatpush3.bf16.msra.mxu0 %v2459_v33  ;;  %2334 = vmatpush3.bf16.msra.mxu1 %v2460_v34 }
  0x4a   : > { %2339 = vmatprep.subr.bf16.mxu0 %v2501_v1  ;;  %2347 = vmatprep.subr.bf16.mxu1 %v2501_v1 }
  0x4c   : > { %2328 = vmatmul.mubr.msk.bf16.vlgmr.msra.gmra.mrb[28].mxu0 %vm340_vm1, %v2590_v8  ;;  %2336 = vmatmul.mubr.msk.bf16.vlgmr.msra.gmra.mrb[28].mxu1 %vm340_vm1, %v2590_v8 }
  0x4d   : > { %2340 = vmatpush3.bf16.msra.mxu0 %v2461_v35  ;;  %2348 = vmatpush3.bf16.msra.mxu1 %v2462_v36 }
  0x4e   : > { %2341 = vmatprep.subr.bf16.mxu0 %v2501_v1  ;;  %2349 = vmatprep.subr.bf16.mxu1 %v2501_v1 }
  0x4f   : > { %2343 = vmatprep.mubr.msk.bf16.mxu0 %vm2502_vm0, %v2501_v1  ;;  %2351 = vmatprep.mubr.msk.bf16.mxu1 %vm2502_vm0, %v2501_v1 }
  0x51   : > { %2342 = vmatpush3.bf16.msra.mxu0 %v2463_v37  ;;  %2350 = vmatpush3.bf16.msra.mxu1 %v2464_v38 }
  0x52   : > { %2355 = vmatprep.subr.bf16.mxu0 %v2501_v1  ;;  %2363 = vmatprep.subr.bf16.mxu1 %v2501_v1 }
  0x54   : > { %2344 = vmatmul.mubr.msk.bf16.vlgmr.msra.gmra.mrb[32].mxu0 %vm340_vm1, %v2590_v8  ;;  %2352 = vmatmul.mubr.msk.bf16.vlgmr.msra.gmra.mrb[32].mxu1 %vm340_vm1, %v2590_v8 }
  0x55   : > { %2356 = vmatpush3.bf16.msra.mxu0 %v2465_v39  ;;  %2364 = vmatpush3.bf16.msra.mxu1 %v2466_v40 }
  0x56   : > { %2357 = vmatprep.subr.bf16.mxu0 %v2501_v1  ;;  %2365 = vmatprep.subr.bf16.mxu1 %v2501_v1 }
  0x57   : > { %2359 = vmatprep.mubr.msk.bf16.mxu0 %vm2502_vm0, %v2501_v1  ;;  %2367 = vmatprep.mubr.msk.bf16.mxu1 %vm2502_vm0, %v2501_v1 }
  0x59   : > { %2358 = vmatpush3.bf16.msra.mxu0 %v2467_v41  ;;  %2366 = vmatpush3.bf16.msra.mxu1 %v2468_v42 }
  0x5a   : > { %2371 = vmatprep.subr.bf16.mxu0 %v2501_v1  ;;  %2379 = vmatprep.subr.bf16.mxu1 %v2501_v1 }
  0x5c   : > { %2360 = vmatmul.mubr.msk.bf16.vlgmr.msra.gmra.mrb[36].mxu0 %vm340_vm1, %v2590_v8  ;;  %2368 = vmatmul.mubr.msk.bf16.vlgmr.msra.gmra.mrb[36].mxu1 %vm340_vm1, %v2590_v8 }
  0x5d   : > { %2372 = vmatpush3.bf16.msra.mxu0 %v2469_v43  ;;  %2380 = vmatpush3.bf16.msra.mxu1 %v2470_v44 }
  0x5e   : > { %2373 = vmatprep.subr.bf16.mxu0 %v2501_v1  ;;  %2381 = vmatprep.subr.bf16.mxu1 %v2501_v1 }
  0x5f   : > { %2375 = vmatprep.mubr.msk.bf16.mxu0 %vm2502_vm0, %v2501_v1  ;;  %2383 = vmatprep.mubr.msk.bf16.mxu1 %vm2502_vm0, %v2501_v1 }
  0x61   : > { %2374 = vmatpush3.bf16.msra.mxu0 %v2471_v45  ;;  %2382 = vmatpush3.bf16.msra.mxu1 %v2472_v46 }
  0x62   : > { %2387 = vmatprep.subr.bf16.mxu0 %v2501_v1  ;;  %2395 = vmatprep.subr.bf16.mxu1 %v2501_v1 }
  0x64   : > { %2376 = vmatmul.mubr.msk.bf16.vlgmr.msra.gmra.mrb[40].mxu0 %vm340_vm1, %v2590_v8  ;;  %2384 = vmatmul.mubr.msk.bf16.vlgmr.msra.gmra.mrb[40].mxu1 %vm340_vm1, %v2590_v8 }
  0x65   : > { %2388 = vmatpush3.bf16.msra.mxu0 %v2473_v47  ;;  %2396 = vmatpush3.bf16.msra.mxu1 %v2474_v48 }
  0x66   : > { %2389 = vmatprep.subr.bf16.mxu0 %v2501_v1  ;;  %2397 = vmatprep.subr.bf16.mxu1 %v2501_v1 }
  0x67   : > { %2391 = vmatprep.mubr.msk.bf16.mxu0 %vm2502_vm0, %v2501_v1  ;;  %2399 = vmatprep.mubr.msk.bf16.mxu1 %vm2502_vm0, %v2501_v1 }
  0x69   : > { %2390 = vmatpush3.bf16.msra.mxu0 %v2475_v49  ;;  %2398 = vmatpush3.bf16.msra.mxu1 %v2476_v50 }
  0x6c   : > { %2392 = vmatmul.mubr.msk.bf16.vlgmr.msra.gmra.mrb[44].mxu0 %vm340_vm1, %v2590_v8  ;;  %2400 = vmatmul.mubr.msk.bf16.vlgmr.msra.gmra.mrb[44].mxu1 %vm340_vm1, %v2590_v8 }
  0xe7   : > { %v378_v51 = vpop.f32.mrb[0].mxu0  ;;  %v434_v52 = vpop.f32.mrb[0].mxu1 }
  0xe8   : > { %v496_v53 = vmul.f32 0.5, %v378_v51  ;;  %v500_v54 = vpack.c.bf16 %v434_v52, %v434_v52  ;;  %v2217_v55 = vpop.f32.mrb[1].mxu0  ;;  %v2225_v56 = vpop.f32.mrb[1].mxu1 }
  0xe9   : > { %v381_v57 = vpop.f32.mrb[2].mxu0  ;;  %v437_v58 = vpop.f32.mrb[2].mxu1 }
  0xea   : > { %v497_v59 = vpack.c.bf16 %v496_v53, %v496_v53  ;;  %501 = vst.msk [vmem:[%s2856_s28] sm:$0xf] %vm498_vm2, %v500_v54  ;;  %v2218_v60 = vpop.f32.mrb[3].mxu0  ;;  %v2226_v61 = vpop.f32.mrb[3].mxu1 }
  0xec   : > { %499 = vst.msk [vmem:[%s2861_s7] sm:$0xf] %vm498_vm2, %v497_v59 }
  0xef   : > { %v490_v62 = vpop.f32.mrb[4].mxu0  ;;  %v555_v63 = vpop.f32.mrb[4].mxu1 }
  0xf0   : > { %v502_v0 = vpack.c.bf16 %v490_v62, %v490_v62  ;;  %v675_v1 = vmul.f32 0.5, %v555_v63  ;;  %v2233_v2 = vpop.f32.mrb[5].mxu0  ;;  %v2241_v3 = vpop.f32.mrb[5].mxu1 }
  0xf1   : > { %v493_v4 = vpop.f32.mrb[6].mxu0  ;;  %v558_v5 = vpop.f32.mrb[6].mxu1 }
  0xf2   : > { %503 = vst.msk [vmem:[%s2870_s9] sm:$0xf] %vm498_vm2, %v502_v0  ;;  %v676_v6 = vpack.c.bf16 %v675_v1, %v675_v1  ;;  %v2234_v7 = vpop.f32.mrb[7].mxu0  ;;  %v2242_v8 = vpop.f32.mrb[7].mxu1 }
  0xf4   : > { %1987 = vst.msk [vmem:[%s2861_s7 + $0x4] sm:$0xf] %vm498_vm2, %v676_v6 }
  0xf7   : > { %v612_v9 = vpop.f32.mrb[8].mxu0  ;;  %v669_v10 = vpop.f32.mrb[8].mxu1 }
  0xf8   : > { %v679_v11 = vpack.c.bf16 %v612_v9, %v612_v9  ;;  %v682_v12 = vpack.c.bf16 %v669_v10, %v669_v10  ;;  %v2249_v13 = vpop.f32.mrb[9].mxu0  ;;  %v2257_v14 = vpop.f32.mrb[9].mxu1 }
  0xf9   : > { %v615_v15 = vpop.f32.mrb[10].mxu0  ;;  %v672_v16 = vpop.f32.mrb[10].mxu1 }
  0xfa   : > { %1988 = vst.msk [vmem:[%s2856_s28 + $0x4] sm:$0xf] %vm498_vm2, %v679_v11  ;;  %1989 = vst.msk [vmem:[%s2870_s9 + $0x4] sm:$0xf] %vm498_vm2, %v682_v12  ;;  %v2250_v17 = vpop.f32.mrb[11].mxu0  ;;  %v2258_v18 = vpop.f32.mrb[11].mxu1 }
  0xff   : > { %v736_v19 = vpop.f32.mrb[12].mxu0  ;;  %v793_v20 = vpop.f32.mrb[12].mxu1 }
 0x100   : > { %v856_v21 = vmul.f32 0.5, %v736_v19  ;;  %v860_v22 = vpack.c.bf16 %v793_v20, %v793_v20  ;;  %v2265_v23 = vpop.f32.mrb[13].mxu0  ;;  %v2273_v24 = vpop.f32.mrb[13].mxu1 }
 0x101   : > { %v739_v25 = vpop.f32.mrb[14].mxu0  ;;  %v796_v26 = vpop.f32.mrb[14].mxu1 }
 0x102   : > { %v857_v27 = vpack.c.bf16 %v856_v21, %v856_v21  ;;  %2012 = vst.msk [vmem:[%s2856_s28 + $0x8] sm:$0xf] %vm498_vm2, %v860_v22  ;;  %v2266_v28 = vpop.f32.mrb[15].mxu0  ;;  %v2274_v29 = vpop.f32.mrb[15].mxu1 }
 0x104   : > { %2011 = vst.msk [vmem:[%s2861_s7 + $0x8] sm:$0xf] %vm498_vm2, %v857_v27 }
 0x107   : > { %v850_v30 = vpop.f32.mrb[16].mxu0  ;;  %v917_v31 = vpop.f32.mrb[16].mxu1 }
 0x108   : > { %v863_v32 = vpack.c.bf16 %v850_v30, %v850_v30  ;;  %v1037_v33 = vmul.f32 0.5, %v917_v31  ;;  %v2281_v34 = vpop.f32.mrb[17].mxu0  ;;  %v2289_v35 = vpop.f32.mrb[17].mxu1 }
 0x109   : > { %v853_v36 = vpop.f32.mrb[18].mxu0  ;;  %v920_v37 = vpop.f32.mrb[18].mxu1 }
 0x10a   : > { %2013 = vst.msk [vmem:[%s2870_s9 + $0x8] sm:$0xf] %vm498_vm2, %v863_v32  ;;  %v1038_v38 = vpack.c.bf16 %v1037_v33, %v1037_v33  ;;  %v2282_v39 = vpop.f32.mrb[19].mxu0  ;;  %v2290_v40 = vpop.f32.mrb[19].mxu1 }
 0x10c   : > { %2035 = vst.msk [vmem:[%s2861_s7 + $0xc] sm:$0xf] %vm498_vm2, %v1038_v38 }
 0x10f   : > { %v974_v41 = vpop.f32.mrb[20].mxu0  ;;  %v1031_v42 = vpop.f32.mrb[20].mxu1 }
 0x110   : > { %v1041_v43 = vpack.c.bf16 %v974_v41, %v974_v41  ;;  %v1044_v44 = vpack.c.bf16 %v1031_v42, %v1031_v42  ;;  %v2297_v45 = vpop.f32.mrb[21].mxu0  ;;  %v2305_v46 = vpop.f32.mrb[21].mxu1 }
 0x111   : > { %v977_v47 = vpop.f32.mrb[22].mxu0  ;;  %v1034_v48 = vpop.f32.mrb[22].mxu1 }
 0x112   : > { %2036 = vst.msk [vmem:[%s2856_s28 + $0xc] sm:$0xf] %vm498_vm2, %v1041_v43  ;;  %2037 = vst.msk [vmem:[%s2870_s9 + $0xc] sm:$0xf] %vm498_vm2, %v1044_v44  ;;  %v2298_v49 = vpop.f32.mrb[23].mxu0  ;;  %v2306_v50 = vpop.f32.mrb[23].mxu1 }
 0x117   : > { %v1098_v51 = vpop.f32.mrb[24].mxu0  ;;  %v1155_v52 = vpop.f32.mrb[24].mxu1 }
 0x118   : > { %v1218_v53 = vmul.f32 0.5, %v1098_v51  ;;  %v1222_v54 = vpack.c.bf16 %v1155_v52, %v1155_v52  ;;  %v2313_v55 = vpop.f32.mrb[25].mxu0  ;;  %v2321_v56 = vpop.f32.mrb[25].mxu1 }
 0x119   : > { %v1101_v57 = vpop.f32.mrb[26].mxu0  ;;  %v1158_v58 = vpop.f32.mrb[26].mxu1 }
 0x11a   : > { %v1219_v59 = vpack.c.bf16 %v1218_v53, %v1218_v53  ;;  %2060 = vst.msk [vmem:[%s2856_s28 + $0x10] sm:$0xf] %vm498_vm2, %v1222_v54  ;;  %v2314_v60 = vpop.f32.mrb[27].mxu0  ;;  %v2322_v61 = vpop.f32.mrb[27].mxu1 }
 0x11c   : > { %2059 = vst.msk [vmem:[%s2861_s7 + $0x10] sm:$0xf] %vm498_vm2, %v1219_v59 }
 0x11f   : > { %v1212_v62 = vpop.f32.mrb[28].mxu0  ;;  %v1279_v63 = vpop.f32.mrb[28].mxu1 }
 0x120   : > { %v1225_v0 = vpack.c.bf16 %v1212_v62, %v1212_v62  ;;  %v1399_v1 = vmul.f32 0.5, %v1279_v63  ;;  %v2329_v2 = vpop.f32.mrb[29].mxu0  ;;  %v2337_v3 = vpop.f32.mrb[29].mxu1 }
 0x121   : > { %v1215_v4 = vpop.f32.mrb[30].mxu0  ;;  %v1282_v5 = vpop.f32.mrb[30].mxu1 }
 0x122   : > { %2061 = vst.msk [vmem:[%s2870_s9 + $0x10] sm:$0xf] %vm498_vm2, %v1225_v0  ;;  %v1400_v6 = vpack.c.bf16 %v1399_v1, %v1399_v1  ;;  %v2330_v7 = vpop.f32.mrb[31].mxu0  ;;  %v2338_v8 = vpop.f32.mrb[31].mxu1 }
 0x124   : > { %2083 = vst.msk [vmem:[%s2861_s7 + $0x14] sm:$0xf] %vm498_vm2, %v1400_v6 }
 0x127   : > { %v1336_v9 = vpop.f32.mrb[32].mxu0  ;;  %v1393_v10 = vpop.f32.mrb[32].mxu1 }
 0x128   : > { %v1403_v11 = vpack.c.bf16 %v1336_v9, %v1336_v9  ;;  %v1406_v12 = vpack.c.bf16 %v1393_v10, %v1393_v10  ;;  %v2345_v13 = vpop.f32.mrb[33].mxu0  ;;  %v2353_v14 = vpop.f32.mrb[33].mxu1 }
 0x129   : > { %v1339_v15 = vpop.f32.mrb[34].mxu0  ;;  %v1396_v16 = vpop.f32.mrb[34].mxu1 }
 0x12a   : > { %2084 = vst.msk [vmem:[%s2856_s28 + $0x14] sm:$0xf] %vm498_vm2, %v1403_v11  ;;  %2085 = vst.msk [vmem:[%s2870_s9 + $0x14] sm:$0xf] %vm498_vm2, %v1406_v12  ;;  %v2346_v17 = vpop.f32.mrb[35].mxu0  ;;  %v2354_v18 = vpop.f32.mrb[35].mxu1 }
 0x12f   : > { %v1460_v19 = vpop.f32.mrb[36].mxu0  ;;  %v1517_v20 = vpop.f32.mrb[36].mxu1 }
 0x130   : > { %v1580_v21 = vmul.f32 0.5, %v1460_v19  ;;  %v1584_v22 = vpack.c.bf16 %v1517_v20, %v1517_v20  ;;  %v2361_v23 = vpop.f32.mrb[37].mxu0  ;;  %v2369_v24 = vpop.f32.mrb[37].mxu1 }
 0x131   : > { %v1463_v25 = vpop.f32.mrb[38].mxu0  ;;  %v1520_v26 = vpop.f32.mrb[38].mxu1 }
 0x132   : > { %v1581_v27 = vpack.c.bf16 %v1580_v21, %v1580_v21  ;;  %2108 = vst.msk [vmem:[%s2856_s28 + $0x18] sm:$0xf] %vm498_vm2, %v1584_v22  ;;  %v2362_v28 = vpop.f32.mrb[39].mxu0  ;;  %v2370_v29 = vpop.f32.mrb[39].mxu1 }
 0x134   : > { %2107 = vst.msk [vmem:[%s2861_s7 + $0x18] sm:$0xf] %vm498_vm2, %v1581_v27 }
 0x137   : > { %v1574_v30 = vpop.f32.mrb[40].mxu0  ;;  %v1641_v31 = vpop.f32.mrb[40].mxu1 }
 0x138   : > { %v1587_v32 = vpack.c.bf16 %v1574_v30, %v1574_v30  ;;  %v1761_v33 = vmul.f32 0.5, %v1641_v31  ;;  %v2377_v34 = vpop.f32.mrb[41].mxu0  ;;  %v2385_v35 = vpop.f32.mrb[41].mxu1 }
 0x139   : > { %v1577_v36 = vpop.f32.mrb[42].mxu0  ;;  %v1644_v37 = vpop.f32.mrb[42].mxu1 }
 0x13a   : > { %2109 = vst.msk [vmem:[%s2870_s9 + $0x18] sm:$0xf] %vm498_vm2, %v1587_v32  ;;  %v1762_v38 = vpack.c.bf16 %v1761_v33, %v1761_v33  ;;  %v2378_v39 = vpop.f32.mrb[43].mxu0  ;;  %v2386_v40 = vpop.f32.mrb[43].mxu1 }
 0x13c   : > { %2131 = vst.msk [vmem:[%s2861_s7 + $0x1c] sm:$0xf] %vm498_vm2, %v1762_v38 }
 0x13f   : > { %v1698_v41 = vpop.f32.mrb[44].mxu0  ;;  %v1755_v42 = vpop.f32.mrb[44].mxu1 }
 0x140   : > { %v1765_v43 = vpack.c.bf16 %v1698_v41, %v1698_v41  ;;  %v1768_v44 = vpack.c.bf16 %v1755_v42, %v1755_v42  ;;  %v2393_v45 = vpop.f32.mrb[45].mxu0  ;;  %v2401_v46 = vpop.f32.mrb[45].mxu1 }
 0x141   : > { %v1701_v47 = vpop.f32.mrb[46].mxu0  ;;  %v1758_v48 = vpop.f32.mrb[46].mxu1 }
 0x142   : > { %2132 = vst.msk [vmem:[%s2856_s28 + $0x1c] sm:$0xf] %vm498_vm2, %v1765_v43  ;;  %2133 = vst.msk [vmem:[%s2870_s9 + $0x1c] sm:$0xf] %vm498_vm2, %v1768_v44  ;;  %v2394_v49 = vpop.f32.mrb[47].mxu0  ;;  %v2402_v50 = vpop.f32.mrb[47].mxu1 }
 0x143 PF: > { %s17_s23 = sadd.s32 1, %s2499_s23   ;;  %s2932_s21 = smov %s2495_s22 }
 0x144   : > { %p14_p5 = scmp.ge.s32.totalorder %s17_s23, 4   ;;  %s2933_s22 = smov %s2935_s24 }
 0x146   :  { %16 = sbr.rel (!%p14_p5) target bundleno = 2 (0x2), region = 132 }

</bundles_post_ra>
